<compile_context>
chip_gen: v7x
topology: tpu7x:2x2x1
jax: 0.10.0
libtpu: 0.0.40
codegen_flags: <defaults>
</compile_context>

<pallas_src>
import functools
import math

import jax
import jax.numpy as jnp
from jax.experimental import pallas as pl
from jax.experimental.pallas import tpu as pltpu


def _sobel_grads(xs, rows, cols):
    """3x3 Sobel cross-correlation (the module's F.conv2d) on a zero-padded slab.

    xs: (>= rows+2, >= cols+2) float32.  Returns g0 (weight[0]) and g1
    (weight[1] = weight[0].T), each (rows, cols).
    """
    def win(dy, dx):
        return xs[dy:dy + rows, dx:dx + cols]

    a00, a01, a02 = win(0, 0), win(0, 1), win(0, 2)
    a10, a12 = win(1, 0), win(1, 2)
    a20, a21, a22 = win(2, 0), win(2, 1), win(2, 2)
    g0 = (a00 - a02) + 2.0 * (a10 - a12) + (a20 - a22)
    g1 = (a00 + 2.0 * a01 + a02) - (a20 + 2.0 * a21 + a22)
    return g0, g1


def _bin_contributions(g0, g1, nbins):
    """Per-bin scatter weights of the HOG binning without atan2/ceil/int-mod.

    Returns a list of nbins planes, entry k equal to the PyTorch reference's
      mag * [floor_bin == k] + (1 - mag) * [ceil_bin == k]
    with floor/ceil of atan2(g0, g1)/pi*nbins taken mod nbins.

    The bin index mod nbins depends only on the gradient direction mod pi, so
    the gradient is folded to the upper half-plane and the floor bin is read
    off nbins-1 boundary sign tests (pure VPU mul/cmp/sub).  Bin k's floor mask
    doubles as bin (k+1)'s ceil mask, so no extra compares per bin are needed.
    Pixels whose reference phase lands exactly on a bin boundary (g0 == 0, or
    g1 == 0 for even nbins, incl. zero gradients) have floor == ceil and
    contribute exactly 1.0 to that single bin; they are routed explicitly.
    Other exact-boundary hits can differ from the float32 atan2 reference by
    one adjacent bin only at ulp-level events.
    """
    mag = jnp.sqrt(g0 * g0 + g1 * g1)

    gy = jnp.abs(g0)                              # fold to the upper half-plane
    gx = jnp.where(g0 < 0.0, -g1, g1)
    axis0 = gy == 0.0                             # theta in {0, pi} (incl. zero grad) -> bin 0
    gx = jnp.where(axis0, 1.0, gx)                # force every boundary test "not passed"
    if nbins % 2 == 0:
        on_boundary = jnp.logical_or(axis0, g1 == 0.0)   # pi/2 is a boundary
    else:
        on_boundary = axis0
    w_floor = jnp.where(on_boundary, 1.0, mag)           # scatter_   (overwrite)
    w_ceil = jnp.where(on_boundary, 0.0, 1.0 - mag)      # scatter_add_

    # passed[j-1] == 1.0  <=>  theta' >= j*pi/nbins   (j = 1 .. nbins-1)
    passed = []
    for j in range(1, nbins):
        if 2 * j == nbins:
            proj = -gx                                   # exact pi/2 boundary
        else:
            ang = j * math.pi / nbins
            proj = math.cos(ang) * gy - math.sin(ang) * gx
        passed.append(jnp.where(proj >= 0.0, 1.0, 0.0))

    def floor_mask(k):                                   # [floor_bin == k] as f32
        if k == 0:
            return 1.0 - passed[0]
        if k == nbins - 1:
            return passed[nbins - 2]
        return passed[k - 1] - passed[k]

    prev = floor_mask(nbins - 1)                         # ceil mask of bin 0 (wrap)
    weights = []
    for k in range(nbins):
        cur = floor_mask(k)
        weights.append(w_floor * cur + w_ceil * prev)
        prev = cur
    return weights


def _hog_kernel(*refs, nbins, pool, hp_s, separate_halo):
    """One grid step = one (possibly lane-packed) batch block x one strip.

    refs (in order):
      x_ref    : (1, X_rows, W)      main padded rows of the strip
      [h_ref]  : (1, 8, W)           next 8 padded rows (only first 2 used)
      pwt_ref  : (wc, C)             lane-pooling matrix, 1/pool^2 folded in,
                                     zero rows for junction/pad conv columns
      out_ref  : (1, 1, nbins*hp_s, C)
      hist_ref : (nbins*hp_s, wc)    VMEM scratch: row-pooled per-bin sums
    """
    if separate_halo:
        x_ref, h_ref, pwt_ref, out_ref, hist_ref = refs
    else:
        x_ref, pwt_ref, out_ref, hist_ref = refs

    wc = hist_ref.shape[1]
    x_rows = x_ref.shape[1]

    # pool-row groups: the working set per iteration is a few (pool, wc) planes
    # (~2 vregs each), so the unrolled bin loop never spills to VMEM.
    for g in range(hp_s):
        r0 = g * pool
        need = r0 + pool + 2
        if need <= x_rows:
            xs = x_ref[0, r0:need, :]
        else:
            # only the last group needs halo rows: small (pool+2, W) concat,
            # never the whole strip.
            k_extra = need - x_rows                       # <= 2
            xs = jnp.concatenate(
                [x_ref[0, r0:x_rows, :], h_ref[0, 0:k_extra, :]], axis=0)

        g0, g1 = _sobel_grads(xs, pool, wc)
        weights = _bin_contributions(g0, g1, nbins)
        for k in range(nbins):
            row = k * hp_s + g
            # row (sublane) pooling: cross-sublane sum -> XLU, off the VALU path
            hist_ref[row:row + 1, :] = jnp.sum(weights[k], axis=0, keepdims=True)

    # lane pooling for every (bin, group) row of this step in ONE MXU matmul
    pooled = jnp.dot(hist_ref[...], pwt_ref[...],
                     preferred_element_type=jnp.float32)
    out_ref[0, 0] = pooled            # single dense store of the whole block


def hog_layer(x, *, nbins=10, pool=8, max_angle=math.pi, stride=1, padding=1,
              dilation=1, block_hp=None):
    """JAX/Pallas equivalent of HOGLayer.forward.  x: (N, 1, H, W) -> (N, nbins, hp, wp)."""
    # TODO(synk): stride/dilation != 1 and max_angle != pi are not implemented
    # (module defaults); the atan2-free bin boundaries assume max_angle == pi.
    assert stride == 1 and dilation == 1
    assert math.isclose(max_angle, math.pi)
    assert nbins >= 2 and pool >= 1
    n, c, h, w = x.shape
    assert c == 1, "HOGLayer weight is (2,1,3,3), groups=1 -> input must be 1-channel"
    x = x.astype(jnp.float32)

    ho = h + 2 * padding - 2                  # conv output size (3x3, stride 1)
    wo = w + 2 * padding - 2
    hp, wp = ho // pool, wo // pool           # AvgPool2d(pool, stride=pool), floor
    assert hp >= 1 and wp >= 1, "image too small for the requested pool size"
    hpad, wpad = ho + 2, wo + 2               # zero-padded conv input size

    # ---- tiling --------------------------------------------------------------
    # hp_s = pooled-row groups per grid step.  The kernel works in `pool`-row
    # groups, so vreg pressure does not depend on hp_s; it only bounds the
    # unrolled body size and the (small) VMEM blocks.  hp_cap=16 already means
    # each strip step covers >= 128 conv rows, amortizing the ~0.35us/step cost.
    step = 8 // math.gcd(pool, 8)             # keeps rows = hp_s*pool % 8 == 0
    hp_cap = 16 if block_hp is None else max(1, block_hp)
    hp_cap = max(step, (hp_cap // step) * step)

    single_strip = hp <= hp_cap
    if single_strip and n == 1 and hp > step:
        # v7x has 2 TensorCores: guarantee >= 2 parallel grid steps.
        single_strip = False
        forced = ((hp + 1) // 2 + step - 1) // step * step
        hp_cap = max(step, min(hp_cap, forced))

    if single_strip:
        hp_s, num_strips, separate_halo = hp, 1, False
        # lane-pack several small images per step so VPU ops use >= ~128 lanes
        if n >= 2 and wpad <= 128:
            bb = min(8, max(1, n // 2), max(1, 256 // wpad))
        else:
            bb = 1
    else:
        num_strips = pl.cdiv(hp, hp_cap)
        hp_s = ((pl.cdiv(hp, num_strips) + step - 1) // step) * step
        separate_halo = True
        bb = 1
    rows = hp_s * pool                        # strip height in conv rows (%8==0)
    nb_blocks = pl.cdiv(n, bb)

    # ---- input prep: batch pad, zero pad, bottom pad for strips, lane pack ----
    x2 = x[:, 0]                                                  # (n, h, w)
    if nb_blocks * bb > n:
        x2 = jnp.pad(x2, ((0, nb_blocks * bb - n), (0, 0), (0, 0)))
    xp = jnp.pad(x2, ((0, 0), (padding, padding), (padding, padding)))
    if separate_halo:
        extra = max(0, num_strips * rows + 8 - hpad)              # room for halo blocks
        if extra:
            xp = jnp.pad(xp, ((0, 0), (0, extra), (0, 0)))
    hin = xp.shape[1]
    # lane-pack bb images per row: (nb_blocks, hin, bb*wpad)
    xp = xp.reshape(nb_blocks, bb, hin, wpad).transpose(0, 2, 1, 3).reshape(
        nb_blocks, hin, bb * wpad)

    # ---- lane-pooling matrix: 1/pool^2 folded in; junction / right-pad conv
    # columns of the packed slab map to all-zero rows so they never reach the output.
    wc = bb * wpad - 2
    cols = jnp.arange(wc, dtype=jnp.int32)
    img = cols // wpad
    u = cols % wpad
    valid = u < wp * pool
    tgt = img * wp + u // pool
    pwt = ((tgt[:, None] == jnp.arange(bb * wp, dtype=jnp.int32)[None, :])
           & valid[:, None]).astype(jnp.float32) / float(pool * pool)

    kernel = functools.partial(_hog_kernel, nbins=nbins, pool=pool, hp_s=hp_s,
                               separate_halo=separate_halo)

    pwt_spec = pl.BlockSpec((wc, bb * wp), lambda b, s: (0, 0))
    if separate_halo:
        in_specs = [
            pl.BlockSpec((1, rows, wpad), lambda b, s: (b, s, 0)),
            pl.BlockSpec((1, 8, wpad),
                         lambda b, s: (b, (s + 1) * (rows // 8), 0)),
            pwt_spec,
        ]
        operands = (xp, xp, pwt)
    else:
        in_specs = [
            pl.BlockSpec((1, hin, bb * wpad), lambda b, s: (b, 0, 0)),
            pwt_spec,
        ]
        operands = (xp, pwt)

    res = pl.pallas_call(
        kernel,
        out_shape=jax.ShapeDtypeStruct(
            (nb_blocks, num_strips, nbins * hp_s, bb * wp), jnp.float32),
        grid=(nb_blocks, num_strips),
        in_specs=in_specs,
        out_specs=pl.BlockSpec((1, 1, nbins * hp_s, bb * wp),
                               lambda b, s: (b, s, 0, 0)),
        scratch_shapes=[pltpu.VMEM((nbins * hp_s, wc), jnp.float32)],
        compiler_params=pltpu.CompilerParams(
            dimension_semantics=("parallel", "parallel"),
            vmem_limit_bytes=32 * 1024 * 1024),
    )(*operands)

    # (nb, ns, nbins*hp_s, bb*wp) -> (n, nbins, hp, wp)
    out = res.reshape(nb_blocks, num_strips, nbins, hp_s, bb, wp)
    out = out.transpose(0, 4, 2, 1, 3, 5).reshape(
        nb_blocks * bb, nbins, num_strips * hp_s, wp)
    return out[:n, :, :hp, :]


def _hog_reference_binned(x, *, nbins=10, pool=8, padding=1):
    """Pure-JAX reference sharing the kernel's binning math (validates the Pallas plumbing)."""
    x = x.astype(jnp.float32)
    n, _, h, w = x.shape
    ho, wo = h + 2 * padding - 2, w + 2 * padding - 2
    hp, wp = ho // pool, wo // pool
    xp = jnp.pad(x, ((0, 0), (0, 0), (padding, padding), (padding, padding)))
    outs = []
    for b in range(n):
        g0, g1 = _sobel_grads(xp[b, 0], ho, wo)
        weights = _bin_contributions(g0, g1, nbins)
        bins = []
        for k in range(nbins):
            bk = weights[k][:hp * pool, :wp * pool].reshape(hp, pool, wp, pool)
            bins.append(bk.mean(axis=(1, 3)))
        outs.append(jnp.stack(bins))
    return jnp.stack(outs)


def _hog_reference_atan2(x, *, nbins=10, pool=8, padding=1, max_angle=math.pi):
    """Pure-JAX transcription of HOGLayer.forward (atan2/floor/ceil/mod binning)."""
    x = x.astype(jnp.float32)
    n, _, h, w = x.shape
    ho, wo = h + 2 * padding - 2, w + 2 * padding - 2
    hp, wp = ho // pool, wo // pool
    xp = jnp.pad(x, ((0, 0), (0, 0), (padding, padding), (padding, padding)))
    outs = []
    for b in range(n):
        g0, g1 = _sobel_grads(xp[b, 0], ho, wo)
        mag = jnp.sqrt(g0 * g0 + g1 * g1)
        pint = jnp.arctan2(g0, g1) / max_angle * nbins
        fl = jnp.mod(jnp.floor(pint).astype(jnp.int32), nbins)
        ce = jnp.mod(jnp.ceil(pint).astype(jnp.int32), nbins)
        bins = []
        for k in range(nbins):
            bk = jnp.where(fl == k, mag, 0.0) + jnp.where(ce == k, 1.0 - mag, 0.0)
            bk = bk[:hp * pool, :wp * pool].reshape(hp, pool, wp, pool)
            bins.append(bk.mean(axis=(1, 3)))
        outs.append(jnp.stack(bins))
    return jnp.stack(outs)


def _check(out, x, *, frac_tol=0.01):
    """Tight check vs the same-math reference; loose (fraction-of-cells) check vs atan2."""
    ref = _hog_reference_binned(x)
    assert bool(jnp.allclose(out, ref, rtol=5e-3, atol=5e-3)), \
        float(jnp.max(jnp.abs(out - ref)))
    ref_t = _hog_reference_atan2(x)
    bad = jnp.abs(out - ref_t) > (5e-3 + 5e-3 * jnp.abs(ref_t))
    frac = float(jnp.mean(bad.astype(jnp.float32)))
    # ulp-level exact-boundary events may flip one adjacent bin for isolated pixels;
    # anything systematic would blow well past this fraction.
    assert frac < frac_tol, frac


if __name__ == "__main__":
    key = jax.random.PRNGKey(0)
    k1, k2, k3 = jax.random.split(key, 3)

    # 1) small single-channel images -> single-strip path, 2 batch blocks
    x = jax.random.uniform(k1, (2, 1, 16, 16), dtype=jnp.float32)
    out = hog_layer(x)
    jax.block_until_ready(out)
    assert out.shape == (2, 10, 2, 2) and out.dtype == jnp.float32
    assert bool(jnp.all(jnp.isfinite(out)))
    _check(out, x)

    # 2) batch of tiny images -> lane-packed path (bb images side by side in lanes)
    x3 = jax.random.uniform(k3, (8, 1, 16, 16), dtype=jnp.float32)
    out3 = hog_layer(x3)
    jax.block_until_ready(out3)
    assert out3.shape == (8, 10, 2, 2)
    _check(out3, x3)

    # 3) larger image, forced small strips -> halo path with a shared last group
    x2 = jax.random.uniform(k2, (1, 1, 144, 144), dtype=jnp.float32)
    out2 = hog_layer(x2, block_hp=8)
    jax.block_until_ready(out2)
    assert out2.shape == (1, 10, 18, 18)
    _check(out2, x2)

    # 4) same image, default tiling -> n==1 is auto-split into >=2 strips (v7x megacore)
    out2b = hog_layer(x2)
    jax.block_until_ready(out2b)
    assert out2b.shape == (1, 10, 18, 18)
    _check(out2b, x2)

    print("KERNEL_OK")
</pallas_src>

<mosaic_0001>
module attributes {stable_mosaic.version = 11 : i64} {
  func.func @_hog_kernel(%arg0: i32, %arg1: i32, %arg2: memref<1x18x18xf32, #tpu.memory_space<vmem>>, %arg3: memref<16x2xf32, #tpu.memory_space<vmem>>, %arg4: memref<1x1x20x2xf32, #tpu.memory_space<vmem>>, %arg5: memref<20x16xf32, #tpu.memory_space<vmem>>) attributes {dimension_semantics = [#tpu.dimension_semantics<parallel>, #tpu.dimension_semantics<parallel>], iteration_bounds = array<i64: 2, 1>, scalar_prefetch = 0 : i64, scratch_operands = 1 : i64, tpu.core_type = #tpu.core_type<tc>, window_params = [{transform_indices = @transform_0, window_bounds = array<i64: 1, 18, 18>}, {pipeline_mode = #tpu.pipeline_mode<synchronous>, transform_indices = @transform_1, window_bounds = array<i64: 16, 2>}, {transform_indices = @transform_2, window_bounds = array<i64: 1, 1, 20, 2>}]} {
    %c0 = arith.constant 0 : index
    %c0_0 = arith.constant 0 : index
    %c0_1 = arith.constant 0 : index
    %0 = vector.load %arg2[%c0, %c0_0, %c0_1] : memref<1x18x18xf32, #tpu.memory_space<vmem>>, vector<1x10x18xf32>
    %1 = vector.shape_cast %0 : vector<1x10x18xf32> to vector<10x18xf32>
    %2 = vector.extract_strided_slice %1 {offsets = [0, 0], sizes = [8, 16], strides = [1, 1]} : vector<10x18xf32> to vector<8x16xf32>
    %3 = vector.extract_strided_slice %1 {offsets = [0, 1], sizes = [8, 16], strides = [1, 1]} : vector<10x18xf32> to vector<8x16xf32>
    %4 = vector.extract_strided_slice %1 {offsets = [0, 2], sizes = [8, 16], strides = [1, 1]} : vector<10x18xf32> to vector<8x16xf32>
    %5 = vector.extract_strided_slice %1 {offsets = [1, 0], sizes = [8, 16], strides = [1, 1]} : vector<10x18xf32> to vector<8x16xf32>
    %6 = vector.extract_strided_slice %1 {offsets = [1, 2], sizes = [8, 16], strides = [1, 1]} : vector<10x18xf32> to vector<8x16xf32>
    %7 = vector.extract_strided_slice %1 {offsets = [2, 0], sizes = [8, 16], strides = [1, 1]} : vector<10x18xf32> to vector<8x16xf32>
    %8 = vector.extract_strided_slice %1 {offsets = [2, 1], sizes = [8, 16], strides = [1, 1]} : vector<10x18xf32> to vector<8x16xf32>
    %9 = vector.extract_strided_slice %1 {offsets = [2, 2], sizes = [8, 16], strides = [1, 1]} : vector<10x18xf32> to vector<8x16xf32>
    %10 = arith.subf %2, %4 : vector<8x16xf32>
    %11 = arith.subf %5, %6 : vector<8x16xf32>
    %cst = arith.constant 2.000000e+00 : f32
    %12 = vector.broadcast %cst : f32 to vector<8x16xf32>
    %13 = arith.mulf %12, %11 : vector<8x16xf32>
    %14 = arith.addf %10, %13 : vector<8x16xf32>
    %15 = arith.subf %7, %9 : vector<8x16xf32>
    %16 = arith.addf %14, %15 : vector<8x16xf32>
    %cst_2 = arith.constant 2.000000e+00 : f32
    %17 = vector.broadcast %cst_2 : f32 to vector<8x16xf32>
    %18 = arith.mulf %17, %3 : vector<8x16xf32>
    %19 = arith.addf %2, %18 : vector<8x16xf32>
    %20 = arith.addf %19, %4 : vector<8x16xf32>
    %cst_3 = arith.constant 2.000000e+00 : f32
    %21 = vector.broadcast %cst_3 : f32 to vector<8x16xf32>
    %22 = arith.mulf %21, %8 : vector<8x16xf32>
    %23 = arith.addf %7, %22 : vector<8x16xf32>
    %24 = arith.addf %23, %9 : vector<8x16xf32>
    %25 = arith.subf %20, %24 : vector<8x16xf32>
    %26 = arith.mulf %16, %16 : vector<8x16xf32>
    %27 = arith.mulf %25, %25 : vector<8x16xf32>
    %28 = arith.addf %26, %27 : vector<8x16xf32>
    %29 = math.sqrt %28 : vector<8x16xf32>
    %30 = math.absf %16 : vector<8x16xf32>
    %cst_4 = arith.constant 0.000000e+00 : f32
    %31 = vector.broadcast %cst_4 : f32 to vector<8x16xf32>
    %32 = arith.cmpf olt, %16, %31 : vector<8x16xf32>
    %cst_5 = arith.constant 0.000000e+00 : f32
    %33 = vector.broadcast %cst_5 : f32 to vector<8x16xf32>
    %34 = arith.subf %33, %25 : vector<8x16xf32>
    %35 = arith.select %32, %34, %25 : vector<8x16xi1>, vector<8x16xf32>
    %cst_6 = arith.constant 0.000000e+00 : f32
    %36 = vector.broadcast %cst_6 : f32 to vector<8x16xf32>
    %37 = arith.cmpf oeq, %30, %36 : vector<8x16xf32>
    %cst_7 = arith.constant 1.000000e+00 : f32
    %38 = vector.broadcast %cst_7 : f32 to vector<8x16xf32>
    %39 = arith.select %37, %38, %35 : vector<8x16xi1>, vector<8x16xf32>
    %cst_8 = arith.constant 0.000000e+00 : f32
    %40 = vector.broadcast %cst_8 : f32 to vector<8x16xf32>
    %41 = arith.cmpf oeq, %25, %40 : vector<8x16xf32>
    %42 = arith.ori %37, %41 : vector<8x16xi1>
    %cst_9 = arith.constant 1.000000e+00 : f32
    %43 = vector.broadcast %cst_9 : f32 to vector<8x16xf32>
    %44 = arith.select %42, %43, %29 : vector<8x16xi1>, vector<8x16xf32>
    %cst_10 = arith.constant 1.000000e+00 : f32
    %45 = vector.broadcast %cst_10 : f32 to vector<8x16xf32>
    %46 = arith.subf %45, %29 : vector<8x16xf32>
    %cst_11 = arith.constant 0.000000e+00 : f32
    %47 = vector.broadcast %cst_11 : f32 to vector<8x16xf32>
    %48 = arith.select %42, %47, %46 : vector<8x16xi1>, vector<8x16xf32>
    %cst_12 = arith.constant 0.95105654 : f32
    %49 = vector.broadcast %cst_12 : f32 to vector<8x16xf32>
    %50 = arith.mulf %49, %30 : vector<8x16xf32>
    %cst_13 = arith.constant 3.090170e-01 : f32
    %51 = vector.broadcast %cst_13 : f32 to vector<8x16xf32>
    %52 = arith.mulf %51, %39 : vector<8x16xf32>
    %53 = arith.subf %50, %52 : vector<8x16xf32>
    %cst_14 = arith.constant 0.000000e+00 : f32
    %54 = vector.broadcast %cst_14 : f32 to vector<8x16xf32>
    %55 = arith.cmpf oge, %53, %54 : vector<8x16xf32>
    %cst_15 = arith.constant 1.000000e+00 : f32
    %cst_16 = arith.constant 0.000000e+00 : f32
    %56 = vector.broadcast %cst_15 : f32 to vector<8x16xf32>
    %57 = vector.broadcast %cst_16 : f32 to vector<8x16xf32>
    %58 = arith.select %55, %56, %57 : vector<8x16xi1>, vector<8x16xf32>
    %cst_17 = arith.constant 8.090170e-01 : f32
    %59 = vector.broadcast %cst_17 : f32 to vector<8x16xf32>
    %60 = arith.mulf %59, %30 : vector<8x16xf32>
    %cst_18 = arith.constant 0.587785244 : f32
    %61 = vector.broadcast %cst_18 : f32 to vector<8x16xf32>
    %62 = arith.mulf %61, %39 : vector<8x16xf32>
    %63 = arith.subf %60, %62 : vector<8x16xf32>
    %cst_19 = arith.constant 0.000000e+00 : f32
    %64 = vector.broadcast %cst_19 : f32 to vector<8x16xf32>
    %65 = arith.cmpf oge, %63, %64 : vector<8x16xf32>
    %cst_20 = arith.constant 1.000000e+00 : f32
    %cst_21 = arith.constant 0.000000e+00 : f32
    %66 = vector.broadcast %cst_20 : f32 to vector<8x16xf32>
    %67 = vector.broadcast %cst_21 : f32 to vector<8x16xf32>
    %68 = arith.select %65, %66, %67 : vector<8x16xi1>, vector<8x16xf32>
    %cst_22 = arith.constant 0.587785244 : f32
    %69 = vector.broadcast %cst_22 : f32 to vector<8x16xf32>
    %70 = arith.mulf %69, %30 : vector<8x16xf32>
    %cst_23 = arith.constant 8.090170e-01 : f32
    %71 = vector.broadcast %cst_23 : f32 to vector<8x16xf32>
    %72 = arith.mulf %71, %39 : vector<8x16xf32>
    %73 = arith.subf %70, %72 : vector<8x16xf32>
    %cst_24 = arith.constant 0.000000e+00 : f32
    %74 = vector.broadcast %cst_24 : f32 to vector<8x16xf32>
    %75 = arith.cmpf oge, %73, %74 : vector<8x16xf32>
    %cst_25 = arith.constant 1.000000e+00 : f32
    %cst_26 = arith.constant 0.000000e+00 : f32
    %76 = vector.broadcast %cst_25 : f32 to vector<8x16xf32>
    %77 = vector.broadcast %cst_26 : f32 to vector<8x16xf32>
    %78 = arith.select %75, %76, %77 : vector<8x16xi1>, vector<8x16xf32>
    %cst_27 = arith.constant 3.090170e-01 : f32
    %79 = vector.broadcast %cst_27 : f32 to vector<8x16xf32>
    %80 = arith.mulf %79, %30 : vector<8x16xf32>
    %cst_28 = arith.constant 0.95105654 : f32
    %81 = vector.broadcast %cst_28 : f32 to vector<8x16xf32>
    %82 = arith.mulf %81, %39 : vector<8x16xf32>
    %83 = arith.subf %80, %82 : vector<8x16xf32>
    %cst_29 = arith.constant 0.000000e+00 : f32
    %84 = vector.broadcast %cst_29 : f32 to vector<8x16xf32>
    %85 = arith.cmpf oge, %83, %84 : vector<8x16xf32>
    %cst_30 = arith.constant 1.000000e+00 : f32
    %cst_31 = arith.constant 0.000000e+00 : f32
    %86 = vector.broadcast %cst_30 : f32 to vector<8x16xf32>
    %87 = vector.broadcast %cst_31 : f32 to vector<8x16xf32>
    %88 = arith.select %85, %86, %87 : vector<8x16xi1>, vector<8x16xf32>
    %cst_32 = arith.constant 0.000000e+00 : f32
    %89 = vector.broadcast %cst_32 : f32 to vector<8x16xf32>
    %90 = arith.subf %89, %39 : vector<8x16xf32>
    %cst_33 = arith.constant 0.000000e+00 : f32
    %91 = vector.broadcast %cst_33 : f32 to vector<8x16xf32>
    %92 = arith.cmpf oge, %90, %91 : vector<8x16xf32>
    %cst_34 = arith.constant 1.000000e+00 : f32
    %cst_35 = arith.constant 0.000000e+00 : f32
    %93 = vector.broadcast %cst_34 : f32 to vector<8x16xf32>
    %94 = vector.broadcast %cst_35 : f32 to vector<8x16xf32>
    %95 = arith.select %92, %93, %94 : vector<8x16xi1>, vector<8x16xf32>
    %cst_36 = arith.constant -3.090170e-01 : f32
    %96 = vector.broadcast %cst_36 : f32 to vector<8x16xf32>
    %97 = arith.mulf %96, %30 : vector<8x16xf32>
    %cst_37 = arith.constant 0.95105654 : f32
    %98 = vector.broadcast %cst_37 : f32 to vector<8x16xf32>
    %99 = arith.mulf %98, %39 : vector<8x16xf32>
    %100 = arith.subf %97, %99 : vector<8x16xf32>
    %cst_38 = arith.constant 0.000000e+00 : f32
    %101 = vector.broadcast %cst_38 : f32 to vector<8x16xf32>
    %102 = arith.cmpf oge, %100, %101 : vector<8x16xf32>
    %cst_39 = arith.constant 1.000000e+00 : f32
    %cst_40 = arith.constant 0.000000e+00 : f32
    %103 = vector.broadcast %cst_39 : f32 to vector<8x16xf32>
    %104 = vector.broadcast %cst_40 : f32 to vector<8x16xf32>
    %105 = arith.select %102, %103, %104 : vector<8x16xi1>, vector<8x16xf32>
    %cst_41 = arith.constant -0.587785244 : f32
    %106 = vector.broadcast %cst_41 : f32 to vector<8x16xf32>
    %107 = arith.mulf %106, %30 : vector<8x16xf32>
    %cst_42 = arith.constant 8.090170e-01 : f32
    %108 = vector.broadcast %cst_42 : f32 to vector<8x16xf32>
    %109 = arith.mulf %108, %39 : vector<8x16xf32>
    %110 = arith.subf %107, %109 : vector<8x16xf32>
    %cst_43 = arith.constant 0.000000e+00 : f32
    %111 = vector.broadcast %cst_43 : f32 to vector<8x16xf32>
    %112 = arith.cmpf oge, %110, %111 : vector<8x16xf32>
    %cst_44 = arith.constant 1.000000e+00 : f32
    %cst_45 = arith.constant 0.000000e+00 : f32
    %113 = vector.broadcast %cst_44 : f32 to vector<8x16xf32>
    %114 = vector.broadcast %cst_45 : f32 to vector<8x16xf32>
    %115 = arith.select %112, %113, %114 : vector<8x16xi1>, vector<8x16xf32>
    %cst_46 = arith.constant -8.090170e-01 : f32
    %116 = vector.broadcast %cst_46 : f32 to vector<8x16xf32>
    %117 = arith.mulf %116, %30 : vector<8x16xf32>
    %cst_47 = arith.constant 0.587785244 : f32
    %118 = vector.broadcast %cst_47 : f32 to vector<8x16xf32>
    %119 = arith.mulf %118, %39 : vector<8x16xf32>
    %120 = arith.subf %117, %119 : vector<8x16xf32>
    %cst_48 = arith.constant 0.000000e+00 : f32
    %121 = vector.broadcast %cst_48 : f32 to vector<8x16xf32>
    %122 = arith.cmpf oge, %120, %121 : vector<8x16xf32>
    %cst_49 = arith.constant 1.000000e+00 : f32
    %cst_50 = arith.constant 0.000000e+00 : f32
    %123 = vector.broadcast %cst_49 : f32 to vector<8x16xf32>
    %124 = vector.broadcast %cst_50 : f32 to vector<8x16xf32>
    %125 = arith.select %122, %123, %124 : vector<8x16xi1>, vector<8x16xf32>
    %cst_51 = arith.constant -0.95105654 : f32
    %126 = vector.broadcast %cst_51 : f32 to vector<8x16xf32>
    %127 = arith.mulf %126, %30 : vector<8x16xf32>
    %cst_52 = arith.constant 3.090170e-01 : f32
    %128 = vector.broadcast %cst_52 : f32 to vector<8x16xf32>
    %129 = arith.mulf %128, %39 : vector<8x16xf32>
    %130 = arith.subf %127, %129 : vector<8x16xf32>
    %cst_53 = arith.constant 0.000000e+00 : f32
    %131 = vector.broadcast %cst_53 : f32 to vector<8x16xf32>
    %132 = arith.cmpf oge, %130, %131 : vector<8x16xf32>
    %cst_54 = arith.constant 1.000000e+00 : f32
    %cst_55 = arith.constant 0.000000e+00 : f32
    %133 = vector.broadcast %cst_54 : f32 to vector<8x16xf32>
    %134 = vector.broadcast %cst_55 : f32 to vector<8x16xf32>
    %135 = arith.select %132, %133, %134 : vector<8x16xi1>, vector<8x16xf32>
    %cst_56 = arith.constant 1.000000e+00 : f32
    %136 = vector.broadcast %cst_56 : f32 to vector<8x16xf32>
    %137 = arith.subf %136, %58 : vector<8x16xf32>
    %138 = arith.mulf %44, %137 : vector<8x16xf32>
    %139 = arith.mulf %48, %135 : vector<8x16xf32>
    %140 = arith.addf %138, %139 : vector<8x16xf32>
    %141 = arith.subf %58, %68 : vector<8x16xf32>
    %142 = arith.mulf %44, %141 : vector<8x16xf32>
    %143 = arith.mulf %48, %137 : vector<8x16xf32>
    %144 = arith.addf %142, %143 : vector<8x16xf32>
    %145 = arith.subf %68, %78 : vector<8x16xf32>
    %146 = arith.mulf %44, %145 : vector<8x16xf32>
    %147 = arith.mulf %48, %141 : vector<8x16xf32>
    %148 = arith.addf %146, %147 : vector<8x16xf32>
    %149 = arith.subf %78, %88 : vector<8x16xf32>
    %150 = arith.mulf %44, %149 : vector<8x16xf32>
    %151 = arith.mulf %48, %145 : vector<8x16xf32>
    %152 = arith.addf %150, %151 : vector<8x16xf32>
    %153 = arith.subf %88, %95 : vector<8x16xf32>
    %154 = arith.mulf %44, %153 : vector<8x16xf32>
    %155 = arith.mulf %48, %149 : vector<8x16xf32>
    %156 = arith.addf %154, %155 : vector<8x16xf32>
    %157 = arith.subf %95, %105 : vector<8x16xf32>
    %158 = arith.mulf %44, %157 : vector<8x16xf32>
    %159 = arith.mulf %48, %153 : vector<8x16xf32>
    %160 = arith.addf %158, %159 : vector<8x16xf32>
    %161 = arith.subf %105, %115 : vector<8x16xf32>
    %162 = arith.mulf %44, %161 : vector<8x16xf32>
    %163 = arith.mulf %48, %157 : vector<8x16xf32>
    %164 = arith.addf %162, %163 : vector<8x16xf32>
    %165 = arith.subf %115, %125 : vector<8x16xf32>
    %166 = arith.mulf %44, %165 : vector<8x16xf32>
    %167 = arith.mulf %48, %161 : vector<8x16xf32>
    %168 = arith.addf %166, %167 : vector<8x16xf32>
    %169 = arith.subf %125, %135 : vector<8x16xf32>
    %170 = arith.mulf %44, %169 : vector<8x16xf32>
    %171 = arith.mulf %48, %165 : vector<8x16xf32>
    %172 = arith.addf %170, %171 : vector<8x16xf32>
    %173 = arith.mulf %44, %135 : vector<8x16xf32>
    %174 = arith.mulf %48, %169 : vector<8x16xf32>
    %175 = arith.addf %173, %174 : vector<8x16xf32>
    %cst_57 = arith.constant dense<0.000000e+00> : vector<16xf32>
    %176 = vector.multi_reduction <add>, %140, %cst_57 [0] : vector<8x16xf32> to vector<16xf32>
    %177 = vector.shape_cast %176 : vector<16xf32> to vector<1x16xf32>
    %c0_58 = arith.constant 0 : index
    %c0_59 = arith.constant 0 : index
    %178 = vector.load %arg5[%c0_58, %c0_59] : memref<20x16xf32, #tpu.memory_space<vmem>>, vector<1x16xf32>
    tpu.vector_store %arg5[%c0_58, %c0_59], %177 {strides = array<i32>} : memref<20x16xf32, #tpu.memory_space<vmem>>, vector<1x16xf32>,
    %cst_60 = arith.constant dense<0.000000e+00> : vector<16xf32>
    %179 = vector.multi_reduction <add>, %144, %cst_60 [0] : vector<8x16xf32> to vector<16xf32>
    %180 = vector.shape_cast %179 : vector<16xf32> to vector<1x16xf32>
    %c2 = arith.constant 2 : index
    %c0_61 = arith.constant 0 : index
    %181 = vector.load %arg5[%c2, %c0_61] : memref<20x16xf32, #tpu.memory_space<vmem>>, vector<1x16xf32>
    tpu.vector_store %arg5[%c2, %c0_61], %180 {strides = array<i32>} : memref<20x16xf32, #tpu.memory_space<vmem>>, vector<1x16xf32>,
    %cst_62 = arith.constant dense<0.000000e+00> : vector<16xf32>
    %182 = vector.multi_reduction <add>, %148, %cst_62 [0] : vector<8x16xf32> to vector<16xf32>
    %183 = vector.shape_cast %182 : vector<16xf32> to vector<1x16xf32>
    %c4 = arith.constant 4 : index
    %c0_63 = arith.constant 0 : index
    %184 = vector.load %arg5[%c4, %c0_63] : memref<20x16xf32, #tpu.memory_space<vmem>>, vector<1x16xf32>
    tpu.vector_store %arg5[%c4, %c0_63], %183 {strides = array<i32>} : memref<20x16xf32, #tpu.memory_space<vmem>>, vector<1x16xf32>,
    %cst_64 = arith.constant dense<0.000000e+00> : vector<16xf32>
    %185 = vector.multi_reduction <add>, %152, %cst_64 [0] : vector<8x16xf32> to vector<16xf32>
    %186 = vector.shape_cast %185 : vector<16xf32> to vector<1x16xf32>
    %c6 = arith.constant 6 : index
    %c0_65 = arith.constant 0 : index
    %187 = vector.load %arg5[%c6, %c0_65] : memref<20x16xf32, #tpu.memory_space<vmem>>, vector<1x16xf32>
    tpu.vector_store %arg5[%c6, %c0_65], %186 {strides = array<i32>} : memref<20x16xf32, #tpu.memory_space<vmem>>, vector<1x16xf32>,
    %cst_66 = arith.constant dense<0.000000e+00> : vector<16xf32>
    %188 = vector.multi_reduction <add>, %156, %cst_66 [0] : vector<8x16xf32> to vector<16xf32>
    %189 = vector.shape_cast %188 : vector<16xf32> to vector<1x16xf32>
    %c8 = arith.constant 8 : index
    %c0_67 = arith.constant 0 : index
    %190 = vector.load %arg5[%c8, %c0_67] : memref<20x16xf32, #tpu.memory_space<vmem>>, vector<1x16xf32>
    tpu.vector_store %arg5[%c8, %c0_67], %189 {strides = array<i32>} : memref<20x16xf32, #tpu.memory_space<vmem>>, vector<1x16xf32>,
    %cst_68 = arith.constant dense<0.000000e+00> : vector<16xf32>
    %191 = vector.multi_reduction <add>, %160, %cst_68 [0] : vector<8x16xf32> to vector<16xf32>
    %192 = vector.shape_cast %191 : vector<16xf32> to vector<1x16xf32>
    %c10 = arith.constant 10 : index
    %c0_69 = arith.constant 0 : index
    %193 = vector.load %arg5[%c10, %c0_69] : memref<20x16xf32, #tpu.memory_space<vmem>>, vector<1x16xf32>
    tpu.vector_store %arg5[%c10, %c0_69], %192 {strides = array<i32>} : memref<20x16xf32, #tpu.memory_space<vmem>>, vector<1x16xf32>,
    %cst_70 = arith.constant dense<0.000000e+00> : vector<16xf32>
    %194 = vector.multi_reduction <add>, %164, %cst_70 [0] : vector<8x16xf32> to vector<16xf32>
    %195 = vector.shape_cast %194 : vector<16xf32> to vector<1x16xf32>
    %c12 = arith.constant 12 : index
    %c0_71 = arith.constant 0 : index
    %196 = vector.load %arg5[%c12, %c0_71] : memref<20x16xf32, #tpu.memory_space<vmem>>, vector<1x16xf32>
    tpu.vector_store %arg5[%c12, %c0_71], %195 {strides = array<i32>} : memref<20x16xf32, #tpu.memory_space<vmem>>, vector<1x16xf32>,
    %cst_72 = arith.constant dense<0.000000e+00> : vector<16xf32>
    %197 = vector.multi_reduction <add>, %168, %cst_72 [0] : vector<8x16xf32> to vector<16xf32>
    %198 = vector.shape_cast %197 : vector<16xf32> to vector<1x16xf32>
    %c14 = arith.constant 14 : index
    %c0_73 = arith.constant 0 : index
    %199 = vector.load %arg5[%c14, %c0_73] : memref<20x16xf32, #tpu.memory_space<vmem>>, vector<1x16xf32>
    tpu.vector_store %arg5[%c14, %c0_73], %198 {strides = array<i32>} : memref<20x16xf32, #tpu.memory_space<vmem>>, vector<1x16xf32>,
    %cst_74 = arith.constant dense<0.000000e+00> : vector<16xf32>
    %200 = vector.multi_reduction <add>, %172, %cst_74 [0] : vector<8x16xf32> to vector<16xf32>
    %201 = vector.shape_cast %200 : vector<16xf32> to vector<1x16xf32>
    %c16 = arith.constant 16 : index
    %c0_75 = arith.constant 0 : index
    %202 = vector.load %arg5[%c16, %c0_75] : memref<20x16xf32, #tpu.memory_space<vmem>>, vector<1x16xf32>
    tpu.vector_store %arg5[%c16, %c0_75], %201 {strides = array<i32>} : memref<20x16xf32, #tpu.memory_space<vmem>>, vector<1x16xf32>,
    %cst_76 = arith.constant dense<0.000000e+00> : vector<16xf32>
    %203 = vector.multi_reduction <add>, %175, %cst_76 [0] : vector<8x16xf32> to vector<16xf32>
    %204 = vector.shape_cast %203 : vector<16xf32> to vector<1x16xf32>
    %c18 = arith.constant 18 : index
    %c0_77 = arith.constant 0 : index
    %205 = vector.load %arg5[%c18, %c0_77] : memref<20x16xf32, #tpu.memory_space<vmem>>, vector<1x16xf32>
    tpu.vector_store %arg5[%c18, %c0_77], %204 {strides = array<i32>} : memref<20x16xf32, #tpu.memory_space<vmem>>, vector<1x16xf32>,
    %c0_78 = arith.constant 0 : index
    %c8_79 = arith.constant 8 : index
    %c0_80 = arith.constant 0 : index
    %206 = vector.load %arg2[%c0_78, %c8_79, %c0_80] : memref<1x18x18xf32, #tpu.memory_space<vmem>>, vector<1x10x18xf32>
    %207 = vector.shape_cast %206 : vector<1x10x18xf32> to vector<10x18xf32>
    %208 = vector.extract_strided_slice %207 {offsets = [0, 0], sizes = [8, 16], strides = [1, 1]} : vector<10x18xf32> to vector<8x16xf32>
    %209 = vector.extract_strided_slice %207 {offsets = [0, 1], sizes = [8, 16], strides = [1, 1]} : vector<10x18xf32> to vector<8x16xf32>
    %210 = vector.extract_strided_slice %207 {offsets = [0, 2], sizes = [8, 16], strides = [1, 1]} : vector<10x18xf32> to vector<8x16xf32>
    %211 = vector.extract_strided_slice %207 {offsets = [1, 0], sizes = [8, 16], strides = [1, 1]} : vector<10x18xf32> to vector<8x16xf32>
    %212 = vector.extract_strided_slice %207 {offsets = [1, 2], sizes = [8, 16], strides = [1, 1]} : vector<10x18xf32> to vector<8x16xf32>
    %213 = vector.extract_strided_slice %207 {offsets = [2, 0], sizes = [8, 16], strides = [1, 1]} : vector<10x18xf32> to vector<8x16xf32>
    %214 = vector.extract_strided_slice %207 {offsets = [2, 1], sizes = [8, 16], strides = [1, 1]} : vector<10x18xf32> to vector<8x16xf32>
    %215 = vector.extract_strided_slice %207 {offsets = [2, 2], sizes = [8, 16], strides = [1, 1]} : vector<10x18xf32> to vector<8x16xf32>
    %216 = arith.subf %208, %210 : vector<8x16xf32>
    %217 = arith.subf %211, %212 : vector<8x16xf32>
    %cst_81 = arith.constant 2.000000e+00 : f32
    %218 = vector.broadcast %cst_81 : f32 to vector<8x16xf32>
    %219 = arith.mulf %218, %217 : vector<8x16xf32>
    %220 = arith.addf %216, %219 : vector<8x16xf32>
    %221 = arith.subf %213, %215 : vector<8x16xf32>
    %222 = arith.addf %220, %221 : vector<8x16xf32>
    %cst_82 = arith.constant 2.000000e+00 : f32
    %223 = vector.broadcast %cst_82 : f32 to vector<8x16xf32>
    %224 = arith.mulf %223, %209 : vector<8x16xf32>
    %225 = arith.addf %208, %224 : vector<8x16xf32>
    %226 = arith.addf %225, %210 : vector<8x16xf32>
    %cst_83 = arith.constant 2.000000e+00 : f32
    %227 = vector.broadcast %cst_83 : f32 to vector<8x16xf32>
    %228 = arith.mulf %227, %214 : vector<8x16xf32>
    %229 = arith.addf %213, %228 : vector<8x16xf32>
    %230 = arith.addf %229, %215 : vector<8x16xf32>
    %231 = arith.subf %226, %230 : vector<8x16xf32>
    %232 = arith.mulf %222, %222 : vector<8x16xf32>
    %233 = arith.mulf %231, %231 : vector<8x16xf32>
    %234 = arith.addf %232, %233 : vector<8x16xf32>
    %235 = math.sqrt %234 : vector<8x16xf32>
    %236 = math.absf %222 : vector<8x16xf32>
    %cst_84 = arith.constant 0.000000e+00 : f32
    %237 = vector.broadcast %cst_84 : f32 to vector<8x16xf32>
    %238 = arith.cmpf olt, %222, %237 : vector<8x16xf32>
    %cst_85 = arith.constant 0.000000e+00 : f32
    %239 = vector.broadcast %cst_85 : f32 to vector<8x16xf32>
    %240 = arith.subf %239, %231 : vector<8x16xf32>
    %241 = arith.select %238, %240, %231 : vector<8x16xi1>, vector<8x16xf32>
    %cst_86 = arith.constant 0.000000e+00 : f32
    %242 = vector.broadcast %cst_86 : f32 to vector<8x16xf32>
    %243 = arith.cmpf oeq, %236, %242 : vector<8x16xf32>
    %cst_87 = arith.constant 1.000000e+00 : f32
    %244 = vector.broadcast %cst_87 : f32 to vector<8x16xf32>
    %245 = arith.select %243, %244, %241 : vector<8x16xi1>, vector<8x16xf32>
    %cst_88 = arith.constant 0.000000e+00 : f32
    %246 = vector.broadcast %cst_88 : f32 to vector<8x16xf32>
    %247 = arith.cmpf oeq, %231, %246 : vector<8x16xf32>
    %248 = arith.ori %243, %247 : vector<8x16xi1>
    %cst_89 = arith.constant 1.000000e+00 : f32
    %249 = vector.broadcast %cst_89 : f32 to vector<8x16xf32>
    %250 = arith.select %248, %249, %235 : vector<8x16xi1>, vector<8x16xf32>
    %cst_90 = arith.constant 1.000000e+00 : f32
    %251 = vector.broadcast %cst_90 : f32 to vector<8x16xf32>
    %252 = arith.subf %251, %235 : vector<8x16xf32>
    %cst_91 = arith.constant 0.000000e+00 : f32
    %253 = vector.broadcast %cst_91 : f32 to vector<8x16xf32>
    %254 = arith.select %248, %253, %252 : vector<8x16xi1>, vector<8x16xf32>
    %cst_92 = arith.constant 0.95105654 : f32
    %255 = vector.broadcast %cst_92 : f32 to vector<8x16xf32>
    %256 = arith.mulf %255, %236 : vector<8x16xf32>
    %cst_93 = arith.constant 3.090170e-01 : f32
    %257 = vector.broadcast %cst_93 : f32 to vector<8x16xf32>
    %258 = arith.mulf %257, %245 : vector<8x16xf32>
    %259 = arith.subf %256, %258 : vector<8x16xf32>
    %cst_94 = arith.constant 0.000000e+00 : f32
    %260 = vector.broadcast %cst_94 : f32 to vector<8x16xf32>
    %261 = arith.cmpf oge, %259, %260 : vector<8x16xf32>
    %cst_95 = arith.constant 1.000000e+00 : f32
    %cst_96 = arith.constant 0.000000e+00 : f32
    %262 = vector.broadcast %cst_95 : f32 to vector<8x16xf32>
    %263 = vector.broadcast %cst_96 : f32 to vector<8x16xf32>
    %264 = arith.select %261, %262, %263 : vector<8x16xi1>, vector<8x16xf32>
    %cst_97 = arith.constant 8.090170e-01 : f32
    %265 = vector.broadcast %cst_97 : f32 to vector<8x16xf32>
    %266 = arith.mulf %265, %236 : vector<8x16xf32>
    %cst_98 = arith.constant 0.587785244 : f32
    %267 = vector.broadcast %cst_98 : f32 to vector<8x16xf32>
    %268 = arith.mulf %267, %245 : vector<8x16xf32>
    %269 = arith.subf %266, %268 : vector<8x16xf32>
    %cst_99 = arith.constant 0.000000e+00 : f32
    %270 = vector.broadcast %cst_99 : f32 to vector<8x16xf32>
    %271 = arith.cmpf oge, %269, %270 : vector<8x16xf32>
    %cst_100 = arith.constant 1.000000e+00 : f32
    %cst_101 = arith.constant 0.000000e+00 : f32
    %272 = vector.broadcast %cst_100 : f32 to vector<8x16xf32>
    %273 = vector.broadcast %cst_101 : f32 to vector<8x16xf32>
    %274 = arith.select %271, %272, %273 : vector<8x16xi1>, vector<8x16xf32>
    %cst_102 = arith.constant 0.587785244 : f32
    %275 = vector.broadcast %cst_102 : f32 to vector<8x16xf32>
    %276 = arith.mulf %275, %236 : vector<8x16xf32>
    %cst_103 = arith.constant 8.090170e-01 : f32
    %277 = vector.broadcast %cst_103 : f32 to vector<8x16xf32>
    %278 = arith.mulf %277, %245 : vector<8x16xf32>
    %279 = arith.subf %276, %278 : vector<8x16xf32>
    %cst_104 = arith.constant 0.000000e+00 : f32
    %280 = vector.broadcast %cst_104 : f32 to vector<8x16xf32>
    %281 = arith.cmpf oge, %279, %280 : vector<8x16xf32>
    %cst_105 = arith.constant 1.000000e+00 : f32
    %cst_106 = arith.constant 0.000000e+00 : f32
    %282 = vector.broadcast %cst_105 : f32 to vector<8x16xf32>
    %283 = vector.broadcast %cst_106 : f32 to vector<8x16xf32>
    %284 = arith.select %281, %282, %283 : vector<8x16xi1>, vector<8x16xf32>
    %cst_107 = arith.constant 3.090170e-01 : f32
    %285 = vector.broadcast %cst_107 : f32 to vector<8x16xf32>
    %286 = arith.mulf %285, %236 : vector<8x16xf32>
    %cst_108 = arith.constant 0.95105654 : f32
    %287 = vector.broadcast %cst_108 : f32 to vector<8x16xf32>
    %288 = arith.mulf %287, %245 : vector<8x16xf32>
    %289 = arith.subf %286, %288 : vector<8x16xf32>
    %cst_109 = arith.constant 0.000000e+00 : f32
    %290 = vector.broadcast %cst_109 : f32 to vector<8x16xf32>
    %291 = arith.cmpf oge, %289, %290 : vector<8x16xf32>
    %cst_110 = arith.constant 1.000000e+00 : f32
    %cst_111 = arith.constant 0.000000e+00 : f32
    %292 = vector.broadcast %cst_110 : f32 to vector<8x16xf32>
    %293 = vector.broadcast %cst_111 : f32 to vector<8x16xf32>
    %294 = arith.select %291, %292, %293 : vector<8x16xi1>, vector<8x16xf32>
    %cst_112 = arith.constant 0.000000e+00 : f32
    %295 = vector.broadcast %cst_112 : f32 to vector<8x16xf32>
    %296 = arith.subf %295, %245 : vector<8x16xf32>
    %cst_113 = arith.constant 0.000000e+00 : f32
    %297 = vector.broadcast %cst_113 : f32 to vector<8x16xf32>
    %298 = arith.cmpf oge, %296, %297 : vector<8x16xf32>
    %cst_114 = arith.constant 1.000000e+00 : f32
    %cst_115 = arith.constant 0.000000e+00 : f32
    %299 = vector.broadcast %cst_114 : f32 to vector<8x16xf32>
    %300 = vector.broadcast %cst_115 : f32 to vector<8x16xf32>
    %301 = arith.select %298, %299, %300 : vector<8x16xi1>, vector<8x16xf32>
    %cst_116 = arith.constant -3.090170e-01 : f32
    %302 = vector.broadcast %cst_116 : f32 to vector<8x16xf32>
    %303 = arith.mulf %302, %236 : vector<8x16xf32>
    %cst_117 = arith.constant 0.95105654 : f32
    %304 = vector.broadcast %cst_117 : f32 to vector<8x16xf32>
    %305 = arith.mulf %304, %245 : vector<8x16xf32>
    %306 = arith.subf %303, %305 : vector<8x16xf32>
    %cst_118 = arith.constant 0.000000e+00 : f32
    %307 = vector.broadcast %cst_118 : f32 to vector<8x16xf32>
    %308 = arith.cmpf oge, %306, %307 : vector<8x16xf32>
    %cst_119 = arith.constant 1.000000e+00 : f32
    %cst_120 = arith.constant 0.000000e+00 : f32
    %309 = vector.broadcast %cst_119 : f32 to vector<8x16xf32>
    %310 = vector.broadcast %cst_120 : f32 to vector<8x16xf32>
    %311 = arith.select %308, %309, %310 : vector<8x16xi1>, vector<8x16xf32>
    %cst_121 = arith.constant -0.587785244 : f32
    %312 = vector.broadcast %cst_121 : f32 to vector<8x16xf32>
    %313 = arith.mulf %312, %236 : vector<8x16xf32>
    %cst_122 = arith.constant 8.090170e-01 : f32
    %314 = vector.broadcast %cst_122 : f32 to vector<8x16xf32>
    %315 = arith.mulf %314, %245 : vector<8x16xf32>
    %316 = arith.subf %313, %315 : vector<8x16xf32>
    %cst_123 = arith.constant 0.000000e+00 : f32
    %317 = vector.broadcast %cst_123 : f32 to vector<8x16xf32>
    %318 = arith.cmpf oge, %316, %317 : vector<8x16xf32>
    %cst_124 = arith.constant 1.000000e+00 : f32
    %cst_125 = arith.constant 0.000000e+00 : f32
    %319 = vector.broadcast %cst_124 : f32 to vector<8x16xf32>
    %320 = vector.broadcast %cst_125 : f32 to vector<8x16xf32>
    %321 = arith.select %318, %319, %320 : vector<8x16xi1>, vector<8x16xf32>
    %cst_126 = arith.constant -8.090170e-01 : f32
    %322 = vector.broadcast %cst_126 : f32 to vector<8x16xf32>
    %323 = arith.mulf %322, %236 : vector<8x16xf32>
    %cst_127 = arith.constant 0.587785244 : f32
    %324 = vector.broadcast %cst_127 : f32 to vector<8x16xf32>
    %325 = arith.mulf %324, %245 : vector<8x16xf32>
    %326 = arith.subf %323, %325 : vector<8x16xf32>
    %cst_128 = arith.constant 0.000000e+00 : f32
    %327 = vector.broadcast %cst_128 : f32 to vector<8x16xf32>
    %328 = arith.cmpf oge, %326, %327 : vector<8x16xf32>
    %cst_129 = arith.constant 1.000000e+00 : f32
    %cst_130 = arith.constant 0.000000e+00 : f32
    %329 = vector.broadcast %cst_129 : f32 to vector<8x16xf32>
    %330 = vector.broadcast %cst_130 : f32 to vector<8x16xf32>
    %331 = arith.select %328, %329, %330 : vector<8x16xi1>, vector<8x16xf32>
    %cst_131 = arith.constant -0.95105654 : f32
    %332 = vector.broadcast %cst_131 : f32 to vector<8x16xf32>
    %333 = arith.mulf %332, %236 : vector<8x16xf32>
    %cst_132 = arith.constant 3.090170e-01 : f32
    %334 = vector.broadcast %cst_132 : f32 to vector<8x16xf32>
    %335 = arith.mulf %334, %245 : vector<8x16xf32>
    %336 = arith.subf %333, %335 : vector<8x16xf32>
    %cst_133 = arith.constant 0.000000e+00 : f32
    %337 = vector.broadcast %cst_133 : f32 to vector<8x16xf32>
    %338 = arith.cmpf oge, %336, %337 : vector<8x16xf32>
    %cst_134 = arith.constant 1.000000e+00 : f32
    %cst_135 = arith.constant 0.000000e+00 : f32
    %339 = vector.broadcast %cst_134 : f32 to vector<8x16xf32>
    %340 = vector.broadcast %cst_135 : f32 to vector<8x16xf32>
    %341 = arith.select %338, %339, %340 : vector<8x16xi1>, vector<8x16xf32>
    %cst_136 = arith.constant 1.000000e+00 : f32
    %342 = vector.broadcast %cst_136 : f32 to vector<8x16xf32>
    %343 = arith.subf %342, %264 : vector<8x16xf32>
    %344 = arith.mulf %250, %343 : vector<8x16xf32>
    %345 = arith.mulf %254, %341 : vector<8x16xf32>
    %346 = arith.addf %344, %345 : vector<8x16xf32>
    %347 = arith.subf %264, %274 : vector<8x16xf32>
    %348 = arith.mulf %250, %347 : vector<8x16xf32>
    %349 = arith.mulf %254, %343 : vector<8x16xf32>
    %350 = arith.addf %348, %349 : vector<8x16xf32>
    %351 = arith.subf %274, %284 : vector<8x16xf32>
    %352 = arith.mulf %250, %351 : vector<8x16xf32>
    %353 = arith.mulf %254, %347 : vector<8x16xf32>
    %354 = arith.addf %352, %353 : vector<8x16xf32>
    %355 = arith.subf %284, %294 : vector<8x16xf32>
    %356 = arith.mulf %250, %355 : vector<8x16xf32>
    %357 = arith.mulf %254, %351 : vector<8x16xf32>
    %358 = arith.addf %356, %357 : vector<8x16xf32>
    %359 = arith.subf %294, %301 : vector<8x16xf32>
    %360 = arith.mulf %250, %359 : vector<8x16xf32>
    %361 = arith.mulf %254, %355 : vector<8x16xf32>
    %362 = arith.addf %360, %361 : vector<8x16xf32>
    %363 = arith.subf %301, %311 : vector<8x16xf32>
    %364 = arith.mulf %250, %363 : vector<8x16xf32>
    %365 = arith.mulf %254, %359 : vector<8x16xf32>
    %366 = arith.addf %364, %365 : vector<8x16xf32>
    %367 = arith.subf %311, %321 : vector<8x16xf32>
    %368 = arith.mulf %250, %367 : vector<8x16xf32>
    %369 = arith.mulf %254, %363 : vector<8x16xf32>
    %370 = arith.addf %368, %369 : vector<8x16xf32>
    %371 = arith.subf %321, %331 : vector<8x16xf32>
    %372 = arith.mulf %250, %371 : vector<8x16xf32>
    %373 = arith.mulf %254, %367 : vector<8x16xf32>
    %374 = arith.addf %372, %373 : vector<8x16xf32>
    %375 = arith.subf %331, %341 : vector<8x16xf32>
    %376 = arith.mulf %250, %375 : vector<8x16xf32>
    %377 = arith.mulf %254, %371 : vector<8x16xf32>
    %378 = arith.addf %376, %377 : vector<8x16xf32>
    %379 = arith.mulf %250, %341 : vector<8x16xf32>
    %380 = arith.mulf %254, %375 : vector<8x16xf32>
    %381 = arith.addf %379, %380 : vector<8x16xf32>
    %cst_137 = arith.constant dense<0.000000e+00> : vector<16xf32>
    %382 = vector.multi_reduction <add>, %346, %cst_137 [0] : vector<8x16xf32> to vector<16xf32>
    %383 = vector.shape_cast %382 : vector<16xf32> to vector<1x16xf32>
    %c1 = arith.constant 1 : index
    %c0_138 = arith.constant 0 : index
    %384 = vector.load %arg5[%c1, %c0_138] : memref<20x16xf32, #tpu.memory_space<vmem>>, vector<1x16xf32>
    tpu.vector_store %arg5[%c1, %c0_138], %383 {strides = array<i32>} : memref<20x16xf32, #tpu.memory_space<vmem>>, vector<1x16xf32>,
    %cst_139 = arith.constant dense<0.000000e+00> : vector<16xf32>
    %385 = vector.multi_reduction <add>, %350, %cst_139 [0] : vector<8x16xf32> to vector<16xf32>
    %386 = vector.shape_cast %385 : vector<16xf32> to vector<1x16xf32>
    %c3 = arith.constant 3 : index
    %c0_140 = arith.constant 0 : index
    %387 = vector.load %arg5[%c3, %c0_140] : memref<20x16xf32, #tpu.memory_space<vmem>>, vector<1x16xf32>
    tpu.vector_store %arg5[%c3, %c0_140], %386 {strides = array<i32>} : memref<20x16xf32, #tpu.memory_space<vmem>>, vector<1x16xf32>,
    %cst_141 = arith.constant dense<0.000000e+00> : vector<16xf32>
    %388 = vector.multi_reduction <add>, %354, %cst_141 [0] : vector<8x16xf32> to vector<16xf32>
    %389 = vector.shape_cast %388 : vector<16xf32> to vector<1x16xf32>
    %c5 = arith.constant 5 : index
    %c0_142 = arith.constant 0 : index
    %390 = vector.load %arg5[%c5, %c0_142] : memref<20x16xf32, #tpu.memory_space<vmem>>, vector<1x16xf32>
    tpu.vector_store %arg5[%c5, %c0_142], %389 {strides = array<i32>} : memref<20x16xf32, #tpu.memory_space<vmem>>, vector<1x16xf32>,
    %cst_143 = arith.constant dense<0.000000e+00> : vector<16xf32>
    %391 = vector.multi_reduction <add>, %358, %cst_143 [0] : vector<8x16xf32> to vector<16xf32>
    %392 = vector.shape_cast %391 : vector<16xf32> to vector<1x16xf32>
    %c7 = arith.constant 7 : index
    %c0_144 = arith.constant 0 : index
    %393 = vector.load %arg5[%c7, %c0_144] : memref<20x16xf32, #tpu.memory_space<vmem>>, vector<1x16xf32>
    tpu.vector_store %arg5[%c7, %c0_144], %392 {strides = array<i32>} : memref<20x16xf32, #tpu.memory_space<vmem>>, vector<1x16xf32>,
    %cst_145 = arith.constant dense<0.000000e+00> : vector<16xf32>
    %394 = vector.multi_reduction <add>, %362, %cst_145 [0] : vector<8x16xf32> to vector<16xf32>
    %395 = vector.shape_cast %394 : vector<16xf32> to vector<1x16xf32>
    %c9 = arith.constant 9 : index
    %c0_146 = arith.constant 0 : index
    %396 = vector.load %arg5[%c9, %c0_146] : memref<20x16xf32, #tpu.memory_space<vmem>>, vector<1x16xf32>
    tpu.vector_store %arg5[%c9, %c0_146], %395 {strides = array<i32>} : memref<20x16xf32, #tpu.memory_space<vmem>>, vector<1x16xf32>,
    %cst_147 = arith.constant dense<0.000000e+00> : vector<16xf32>
    %397 = vector.multi_reduction <add>, %366, %cst_147 [0] : vector<8x16xf32> to vector<16xf32>
    %398 = vector.shape_cast %397 : vector<16xf32> to vector<1x16xf32>
    %c11 = arith.constant 11 : index
    %c0_148 = arith.constant 0 : index
    %399 = vector.load %arg5[%c11, %c0_148] : memref<20x16xf32, #tpu.memory_space<vmem>>, vector<1x16xf32>
    tpu.vector_store %arg5[%c11, %c0_148], %398 {strides = array<i32>} : memref<20x16xf32, #tpu.memory_space<vmem>>, vector<1x16xf32>,
    %cst_149 = arith.constant dense<0.000000e+00> : vector<16xf32>
    %400 = vector.multi_reduction <add>, %370, %cst_149 [0] : vector<8x16xf32> to vector<16xf32>
    %401 = vector.shape_cast %400 : vector<16xf32> to vector<1x16xf32>
    %c13 = arith.constant 13 : index
    %c0_150 = arith.constant 0 : index
    %402 = vector.load %arg5[%c13, %c0_150] : memref<20x16xf32, #tpu.memory_space<vmem>>, vector<1x16xf32>
    tpu.vector_store %arg5[%c13, %c0_150], %401 {strides = array<i32>} : memref<20x16xf32, #tpu.memory_space<vmem>>, vector<1x16xf32>,
    %cst_151 = arith.constant dense<0.000000e+00> : vector<16xf32>
    %403 = vector.multi_reduction <add>, %374, %cst_151 [0] : vector<8x16xf32> to vector<16xf32>
    %404 = vector.shape_cast %403 : vector<16xf32> to vector<1x16xf32>
    %c15 = arith.constant 15 : index
    %c0_152 = arith.constant 0 : index
    %405 = vector.load %arg5[%c15, %c0_152] : memref<20x16xf32, #tpu.memory_space<vmem>>, vector<1x16xf32>
    tpu.vector_store %arg5[%c15, %c0_152], %404 {strides = array<i32>} : memref<20x16xf32, #tpu.memory_space<vmem>>, vector<1x16xf32>,
    %cst_153 = arith.constant dense<0.000000e+00> : vector<16xf32>
    %406 = vector.multi_reduction <add>, %378, %cst_153 [0] : vector<8x16xf32> to vector<16xf32>
    %407 = vector.shape_cast %406 : vector<16xf32> to vector<1x16xf32>
    %c17 = arith.constant 17 : index
    %c0_154 = arith.constant 0 : index
    %408 = vector.load %arg5[%c17, %c0_154] : memref<20x16xf32, #tpu.memory_space<vmem>>, vector<1x16xf32>
    tpu.vector_store %arg5[%c17, %c0_154], %407 {strides = array<i32>} : memref<20x16xf32, #tpu.memory_space<vmem>>, vector<1x16xf32>,
    %cst_155 = arith.constant dense<0.000000e+00> : vector<16xf32>
    %409 = vector.multi_reduction <add>, %381, %cst_155 [0] : vector<8x16xf32> to vector<16xf32>
    %410 = vector.shape_cast %409 : vector<16xf32> to vector<1x16xf32>
    %c19 = arith.constant 19 : index
    %c0_156 = arith.constant 0 : index
    %411 = vector.load %arg5[%c19, %c0_156] : memref<20x16xf32, #tpu.memory_space<vmem>>, vector<1x16xf32>
    tpu.vector_store %arg5[%c19, %c0_156], %410 {strides = array<i32>} : memref<20x16xf32, #tpu.memory_space<vmem>>, vector<1x16xf32>,
    %c0_157 = arith.constant 0 : index
    %c0_158 = arith.constant 0 : index
    %412 = vector.load %arg5[%c0_157, %c0_158] : memref<20x16xf32, #tpu.memory_space<vmem>>, vector<20x16xf32>
    %c0_159 = arith.constant 0 : index
    %c0_160 = arith.constant 0 : index
    %413 = vector.load %arg3[%c0_159, %c0_160] : memref<16x2xf32, #tpu.memory_space<vmem>>, vector<16x2xf32>
    %cst_161 = arith.constant dense<0.000000e+00> : vector<20x2xf32>
    %414 = tpu.matmul %412, %413, %cst_161 {dimension_numbers = #tpu.dot_dimension_numbers<[1], [0], [0], [1], [0, 0, 1, 1], [], []>} : vector<20x16xf32>, vector<16x2xf32>, vector<20x2xf32> -> vector<20x2xf32>
    %c0_162 = arith.constant 0 : index
    %c0_163 = arith.constant 0 : index
    %c0_164 = arith.constant 0 : index
    %c0_165 = arith.constant 0 : index
    %415 = vector.load %arg4[%c0_162, %c0_163, %c0_164, %c0_165] : memref<1x1x20x2xf32, #tpu.memory_space<vmem>>, vector<1x1x20x2xf32>
    %416 = vector.shape_cast %415 : vector<1x1x20x2xf32> to vector<20x2xf32>
    %417 = vector.shape_cast %414 : vector<20x2xf32> to vector<1x1x20x2xf32>
    tpu.vector_store %arg4[%c0_162, %c0_163, %c0_164, %c0_165], %417 {strides = array<i32>} : memref<1x1x20x2xf32, #tpu.memory_space<vmem>>, vector<1x1x20x2xf32>,
    return
  }
  func.func @transform_0(%arg0: i32, %arg1: i32) -> (i32, i32, i32) {
    %c0_i32 = arith.constant 0 : i32
    %c0_i32_0 = arith.constant 0 : i32
    %c0_i32_1 = arith.constant 0 : i32
    return %arg0, %c0_i32, %c0_i32_0 : i32, i32, i32
  }
  func.func @transform_1(%arg0: i32, %arg1: i32) -> (i32, i32) {
    %c0_i32 = arith.constant 0 : i32
    %c0_i32_0 = arith.constant 0 : i32
    %c0_i32_1 = arith.constant 0 : i32
    return %c0_i32, %c0_i32_0 : i32, i32
  }
  func.func @transform_2(%arg0: i32, %arg1: i32) -> (i32, i32, i32, i32) {
    %c0_i32 = arith.constant 0 : i32
    %c0_i32_0 = arith.constant 0 : i32
    %c0_i32_1 = arith.constant 0 : i32
    return %arg0, %arg1, %c0_i32, %c0_i32_0 : i32, i32, i32, i32
  }
}

</mosaic_0001>

<bundles_post_ra>
// kernel: tpu_custom_call.1
= control target key start
LH: loop header
LB: loop body
LE: loop exit
PB: predicated region body
PF: predicated region fallthrough
CT: control target
= control target key end

     0   :  { %s921_s9 = smov 0   ;;  %s923_s10 = smov 0   ;;  %s1179_s0 = inlined_call_operand.vmem [shape: f32[2,18,18], index: 0, kind: input, shape index: {}]   ;;  %s1180_s1 = inlined_call_operand.vmem [shape: f32[16,2], index: 1, kind: input, shape index: {}]   ;;  %s1181_s2 = inlined_call_operand.vmem [shape: f32[2,1,20,2], index: 2, kind: output, shape index: {}]  }
   0x1   :  { %s925_s11 = smov 0  }
   0x2 LB: > { %s24_s12 = sadd.s32 1, %s895_s10  ;;  %p812_p0 = scmp.ge.s32.totalorder %s899_s11, 1  ;;  %s899_s11 = sphi %s925_s11, %s12_s11   ;;  %s895_s10 = sphi %s923_s10, %s1183_s10   ;;  %s891_s9 = sphi %s921_s9, %s1182_s9  }
   0x3   : > { %p26_p1 = scmp.ge.s32.totalorder %s24_s12, 2  ;;  %p126_p2 = scmp.lt.s32.totalorder %s899_s11, 3 }
   0x5   : > { %s1185_s12 = smov (%p26_p1, %s24_s12), 0  ;;  %p127_p3 = pnand %p812_p0, %p126_p2 }
   0x6   : > { %p152_p4 = scmp.lt.s32.totalorder (!%p127_p3), %s891_s9, 1  ;;  %s901_s17 = smov (!%p127_p3), 126   ;;  %v629_v8 = vld [vmem:[%s1180_s1] sm:$0xff] (!%p127_p3)  ;;  %v630_v9 = vld [vmem:[%s1180_s1 + $0x8] sm:$0xff] (!%p127_p3)  ;;  %v903_v10 = vmov (!%p127_p3), 0.0|0.0   ;;  %vm904_vm0 = vmmov (!%p127_p3), 0  }
   0x7   : > { %130 = sbr.rel (%p127_p3) target bundleno = 465 (0x1d1), region = 28  ;;  %s902_s18 = smov (!%p127_p3), 127   ;;  %838 = vmatprep.subr.bf16.mxu0 (!%p127_p3), %v903_v10  ;;  %841 = vmatprep.subr.bf16.mxu1 (!%p127_p3), %v903_v10  ;;  %v839_v11 = vpack.c.bf16 (!%p127_p3), %v630_v9, %v629_v8  ;;  %v905_v12 = vmov (!%p127_p3), 0.0   ;;  %vm182_vm1 = vcmask (!%p127_p3), 1046528   ;;  %vm190_vm2 = vcmask (!%p127_p3), 1045504  }
   0x8   : > { %829 = vmatprep.mubr.msk.f32.mxu0 (!%p127_p3), %vm904_vm0, %v905_v12  ;;  %832 = vmatprep.mubr.msk.f32.mxu1 (!%p127_p3), %vm904_vm0, %v905_v12 }
   0x9   : > { %840 = vmatpush3.bf16.msra.mxu0 (!%p127_p3), %v839_v11  ;;  %842 = vmatpush3.bf16.msra.mxu1 (!%p127_p3), %v839_v11 }
   0xe   : > { %s1187_s9 = smov (!%p152_p4, %s891_s9), 1 }
   0xf   : > { %s843_s13 = smul.u32 24, %s1187_s9 }
  0x11   : > { %s156_s16 = scalar_lea.vmem %s1179_s0, %s843_s13  ;;  %s165_s25 = scalar_lea.vmem %s1181_s2, %s843_s13 }
  0x12   : > { %v947_v0 = vld [vmem:[%s156_s16 + $0x8] sm:$0xff]  ;;  %v166_v1 = vld [vmem:[%s156_s16] sm:$0xff]  ;;  %v399_v2 = vld [vmem:[%s156_s16 + $0x10] sm:$0x3] }
  0x13   : > { %401 = vrot.lane.b32.xlu1 %v947_v0, %s901_s17  ;;  %169 = vrot.lane.b32.xlu0 %v166_v1, %s901_s17  ;;  %v167_v3 = vld [vmem:[%s156_s16 + $0x8] sm:$0x3]  ;;  %v196_v5 = vmul.f32 2.0, %v166_v1  ;;  %v433_v6 = vmul.f32 2.0, %v399_v2  ;;  %v426_v7 = vmul.f32 2.0, %v947_v0 }
  0x14   : > { %v203_v4 = vmul.f32 2.0, %v167_v3 }
  0x17   : > { %406 = vrot.lane.b32.xlu1 %v399_v2, %s901_s17  ;;  %174 = vrot.lane.b32.xlu0 %v167_v3, %s901_s17 }
  0x1b   : > { %205 = vrot.lane.b32.xlu1 %v203_v4, %s902_s18  ;;  %198 = vrot.lane.b32.xlu0 %v196_v5, %s902_s18 }
  0x1f   : > { %435 = vrot.lane.b32.xlu1 %v433_v6, %s902_s18  ;;  %428 = vrot.lane.b32.xlu0 %v426_v7, %s902_s18 }
  0x85   : > { %v402_v13 = vpop.permute.xlu1 %401  ;;  %v170_v14 = vpop.permute.xlu0 %169 }
  0x86   : > { %v404_v15 = vsub.f32 %v947_v0, %v402_v13  ;;  %v172_v16 = vsub.f32 %v166_v1, %v170_v14 }
  0x88   : > { %v410_v17 = vmul.f32 2.0, %v404_v15  ;;  %v178_v18 = vmul.f32 2.0, %v172_v16  ;;  %v421_v35 = vrot.slane %v404_v15, 2  ;;  %v191_v36 = vrot.slane %v172_v16, 2 }
  0x89   : > { %v407_v19 = vpop.permute.xlu1 %406  ;;  %v175_v20 = vpop.permute.xlu0 %174 }
  0x8a   : > { %v409_v21 = vsub.f32 %v399_v2, %v407_v19  ;;  %v177_v22 = vsub.f32 %v167_v3, %v175_v20  ;;  %v414_v25 = vrot.slane %v410_v17, 1  ;;  %v183_v26 = vrot.slane %v178_v18, 1 }
  0x8c   : > { %v411_v23 = vmul.f32 2.0, %v409_v21  ;;  %v179_v24 = vmul.f32 2.0, %v177_v22  ;;  %v422_v30 = vrot.slane %v409_v21, 2  ;;  %v192_v32 = vrot.slane %v177_v22, 2 }
  0x8d   : > { %v206_v27 = vpop.permute.xlu1 %205  ;;  %v199_v28 = vpop.permute.xlu0 %198 }
  0x8e   : > { %v415_v29 = vrot.slane %v411_v23, 1  ;;  %v184_v31 = vrot.slane %v179_v24, 1  ;;  %v208_v33 = vadd.f32 %v206_v27, %v167_v3  ;;  %v201_v34 = vadd.f32 %v199_v28, %v166_v1 }
  0x8f   : > { %v423_v45 = vsel %vm190_vm2, %v421_v35, %v422_v30  ;;  %v193_v46 = vsel %vm190_vm2, %v191_v36, %v192_v32 }
  0x90   : > { %v416_v37 = vsel %vm182_vm1, %v414_v25, %v415_v29  ;;  %v185_v38 = vsel %vm182_vm1, %v183_v26, %v184_v31  ;;  %v209_v41 = vadd.f32 %v208_v33, %v175_v20  ;;  %v202_v42 = vadd.f32 %v201_v34, %v170_v14 }
  0x91   : > { %v418_v39 = vadd.f32 %v416_v37, %v404_v15  ;;  %v187_v40 = vadd.f32 %v185_v38, %v172_v16  ;;  %v436_v43 = vpop.permute.xlu1 %435  ;;  %v429_v44 = vpop.permute.xlu0 %428 }
  0x92   : > { %v438_v47 = vadd.f32 %v436_v43, %v399_v2  ;;  %v431_v48 = vadd.f32 %v429_v44, %v947_v0  ;;  %v213_v51 = vrot.slane %v209_v41, 2  ;;  %v212_v52 = vrot.slane %v202_v42, 2 }
  0x93   : > { %v965_v49 = vadd.f32 %v423_v45, %v418_v39  ;;  %v195_v50 = vadd.f32 %v193_v46, %v187_v40 }
  0x94   : > { %v439_v53 = vadd.f32 %v438_v47, %v407_v19  ;;  %v432_v54 = vadd.f32 %v431_v48, %v402_v13  ;;  %v214_v57 = vsel %vm190_vm2, %v212_v52, %v213_v51 }
  0x95   : > { %v968_v55 = vand.u32 2147483647, %v965_v49  ;;  %v970_v56 = vand.u32 2147483647, %v195_v50  ;;  %v973_v59 = vsub.f32 %v202_v42, %v214_v57  ;;  %v217_v61 = vmul.f32 %v195_v50, %v195_v50 }
  0x96   : > { %v443_v58 = vrot.slane %v439_v53, 2  ;;  %v442_v60 = vrot.slane %v432_v54, 2  ;;  %vm228_vm3 = vcmp.lt.f32.partialorder %v195_v50, 0.0  ;;  %vm458_vm5 = vcmp.lt.f32.partialorder %v965_v49, 0.0 }
  0x97   : > { %v218_v62 = vmul.f32 %v973_v59, %v973_v59  ;;  %v978_v63 = vmul.f32 0.95105654, %v968_v55  ;;  %vm231_vm4 = vcmp.eq.f32.partialorder %v970_v56, 0.0  ;;  %v238_v0 = vmul.f32 0.95105654, %v970_v56 }
  0x98   : > { %v983_v1 = vmul.f32 0.809017, %v968_v55  ;;  %v444_v2 = vsel %vm190_vm2, %v442_v60, %v443_v58  ;;  %v243_v3 = vmul.f32 0.809017, %v970_v56  ;;  %v248_v4 = vmul.f32 0.58778524, %v970_v56 }
  0x99   : > { %v988_v5 = vadd.f32 %v218_v62, %v217_v61  ;;  %v229_v6 = vsub.f32 0.0, %v973_v59  ;;  %v253_v7 = vmul.f32 0.309017, %v970_v56  ;;  %v261_v8 = vmul.f32 -0.309017, %v970_v56 }
  0x9a   : > { %v265_v9 = vmul.f32 -0.58778524, %v970_v56  ;;  %v269_v10 = vmul.f32 -0.809017, %v970_v56  ;;  %v273_v11 = vmul.f32 -0.95105654, %v970_v56  ;;  %v997_v13 = vsub.f32 %v432_v54, %v444_v2 }
  0x9b   : > { %873 = vrsqrt.f32 %v988_v5  ;;  %v230_v14 = vsel %vm228_vm3, %v229_v6, %v973_v59  ;;  %v1003_v15 = vmul.f32 0.58778524, %v968_v55  ;;  %v1006_v16 = vmul.f32 0.309017, %v968_v55 }
  0x9c   : > { %v1009_v17 = vmul.f32 -0.309017, %v968_v55  ;;  %v225_v18 = vand.u32 2147483648, %v988_v5  ;;  %v232_v19 = vsel %vm231_vm4, 1.0, %v230_v14  ;;  %v1015_v20 = vmul.f32 -0.58778524, %v968_v55 }
  0x9d   : > { %v1018_v21 = vmul.f32 -0.809017, %v968_v55  ;;  %v447_v22 = vmul.f32 %v965_v49, %v965_v49  ;;  %vm233_vm6 = vcmp.eq.f32.partialorder %v973_v59, 0.0  ;;  %v239_v23 = vmul.f32 0.309017, %v232_v19 }
  0x9e   : > { %v244_v24 = vmul.f32 0.58778524, %v232_v19  ;;  %v249_v25 = vmul.f32 0.809017, %v232_v19  ;;  %vm222_vm7 = vcmp.eq.f32.partialorder %v988_v5, inf  ;;  %v258_v27 = vsub.f32 0.0, %v232_v19 }
  0x9f   : > { %v254_v26 = vmul.f32 0.95105654, %v232_v19  ;;  %v1025_v28 = vmul.f32 -0.95105654, %v968_v55  ;;  %v448_v29 = vmul.f32 %v997_v13, %v997_v13  ;;  %vm224_vm8 = vcmp.eq.f32.partialorder %v988_v5, 0.0 }
  0xa0   : > { %v240_v30 = vsub.f32 %v238_v0, %v239_v23  ;;  %v245_v31 = vsub.f32 %v243_v3, %v244_v24  ;;  %v250_v32 = vsub.f32 %v248_v4, %v249_v25  ;;  %v266_v33 = vsub.f32 %v265_v9, %v249_v25 }
  0xa1   : > { %v255_v34 = vsub.f32 %v253_v7, %v254_v26  ;;  %v262_v35 = vsub.f32 %v261_v8, %v254_v26  ;;  %v270_v36 = vsub.f32 %v269_v10, %v244_v24  ;;  %v459_v37 = vsub.f32 0.0, %v997_v13 }
  0xa2   : > { %vm241_vm9 = vcmp.ge.f32.partialorder %v240_v30, 0.0  ;;  %vm246_vm10 = vcmp.ge.f32.partialorder %v245_v31, 0.0  ;;  %vm251_vm11 = vcmp.ge.f32.partialorder %v250_v32, 0.0  ;;  %vm259_vm12 = vcmp.ge.f32.partialorder %v258_v27, 0.0 }
  0xa3   : > { %v242_v38 = vsel %vm241_vm9, 1.0, %v905_v12  ;;  %v247_v39 = vsel %vm246_vm10, 1.0, %v905_v12  ;;  %vm256_vm13 = vcmp.ge.f32.partialorder %v255_v34, 0.0  ;;  %v1033_v40 = vadd.f32 %v448_v29, %v447_v22 }
  0xa4   : > { %v252_v41 = vsel %vm251_vm11, 1.0, %v905_v12  ;;  %vm263_vm14 = vcmp.ge.f32.partialorder %v262_v35, 0.0  ;;  %vm267_vm15 = vcmp.ge.f32.partialorder %v266_v33, 0.0  ;;  %vm271_vm1 = vcmp.ge.f32.partialorder %v270_v36, 0.0 }
  0xa5   : > { %v874_v42 = vpop.eup %873  ;;  %v257_v43 = vsel %vm256_vm13, 1.0, %v905_v12  ;;  %v260_v44 = vsel %vm259_vm12, 1.0, %v905_v12  ;;  %v274_v45 = vsub.f32 %v273_v11, %v239_v23  ;;  %v1041_v46 = vsel %vm458_vm5, %v459_v37, %v997_v13  ;;  %vm234_vm5 = vmor %vm231_vm4, %vm233_vm6 }
  0xa6   : > { %v221_v47 = vmul.f32 %v874_v42, %v988_v5  ;;  %v264_v48 = vsel %vm263_vm14, 1.0, %v905_v12  ;;  %v268_v50 = vsel %vm267_vm15, 1.0, %v905_v12  ;;  %v272_v51 = vsel %vm271_vm1, 1.0, %v905_v12 }
  0xa7   : > { %vm316_vm2 = vcmask 130048   ;;  %vm275_vm3 = vcmp.ge.f32.partialorder %v274_v45, 0.0  ;;  %v277_v52 = vsub.f32 1.0, %v242_v38  ;;  %v281_v53 = vsub.f32 %v242_v38, %v247_v39 }
  0xa8   : > { %v285_v54 = vsub.f32 %v247_v39, %v252_v41  ;;  %v223_v57 = vsel %vm222_vm7, %v988_v5, %v221_v47  ;;  %v276_v49 = vsel %vm275_vm3, 1.0, %v905_v12  ;;  %v289_v58 = vsub.f32 %v252_v41, %v257_v43 }
  0xa9   : > { %v293_v60 = vsub.f32 %v257_v43, %v260_v44  ;;  %v226_v61 = vsel %vm224_vm8, %v225_v18, %v223_v57  ;;  %v297_v62 = vsub.f32 %v260_v44, %v264_v48  ;;  %v301_v0 = vsub.f32 %v264_v48, %v268_v50 }
  0xaa   : > { %v305_v2 = vsub.f32 %v268_v50, %v272_v51  ;;  %v235_v3 = vsel %vm234_vm5, 1.0, %v226_v61  ;;  %v236_v4 = vsub.f32 1.0, %v226_v61  ;;  %v309_v6 = vsub.f32 %v272_v51, %v276_v49 }
  0xab   : > { %875 = vrsqrt.f32 %v1033_v40  ;;  %v278_v7 = vmul.f32 %v277_v52, %v235_v3  ;;  %v282_v8 = vmul.f32 %v281_v53, %v235_v3  ;;  %v286_v9 = vmul.f32 %v285_v54, %v235_v3 }
  0xac   : > { %v290_v10 = vmul.f32 %v289_v58, %v235_v3  ;;  %v237_v11 = vsel %vm234_vm5, 0.0, %v236_v4  ;;  %v294_v5 = vmul.f32 %v293_v60, %v235_v3  ;;  %v298_v14 = vmul.f32 %v297_v62, %v235_v3 }
  0xad   : > { %v302_v18 = vmul.f32 %v301_v0, %v235_v3  ;;  %v279_v59 = vmul.f32 %v276_v49, %v237_v11  ;;  %v283_v19 = vmul.f32 %v277_v52, %v237_v11  ;;  %v287_v56 = vmul.f32 %v281_v53, %v237_v11 }
  0xae   : > { %v291_v22 = vmul.f32 %v285_v54, %v237_v11  ;;  %v295_v23 = vmul.f32 %v289_v58, %v237_v11  ;;  %v299_v24 = vmul.f32 %v293_v60, %v237_v11  ;;  %v303_v25 = vmul.f32 %v297_v62, %v237_v11 }
  0xaf   : > { %v306_v26 = vmul.f32 %v305_v2, %v235_v3  ;;  %v280_v27 = vadd.f32 %v279_v59, %v278_v7  ;;  %v284_v29 = vadd.f32 %v283_v19, %v282_v8  ;;  %v288_v30 = vadd.f32 %v287_v56, %v286_v9 }
  0xb0   : > { %v292_v31 = vadd.f32 %v291_v22, %v290_v10  ;;  %v296_v32 = vadd.f32 %v295_v23, %v294_v5  ;;  %v300_v33 = vadd.f32 %v299_v24, %v298_v14  ;;  %v304_v34 = vadd.f32 %v303_v25, %v302_v18 }
  0xb1   : > { %v307_v35 = vmul.f32 %v301_v0, %v237_v11  ;;  %v310_v36 = vmul.f32 %v309_v6, %v235_v3  ;;  %v311_v37 = vmul.f32 %v305_v2, %v237_v11  ;;  %v313_v38 = vmul.f32 %v276_v49, %v235_v3 }
  0xb2   : > { %v314_v39 = vmul.f32 %v309_v6, %v237_v11  ;;  %v317_v42 = vsel %vm316_vm2, %v280_v27, 0.0  ;;  %v326_v43 = vsel %vm316_vm2, %v284_v29, 0.0  ;;  %v334_v44 = vsel %vm316_vm2, %v288_v30, 0.0 }
  0xb3   : > { %v308_v41 = vadd.f32 %v307_v35, %v306_v26  ;;  %v312_v45 = vadd.f32 %v311_v37, %v310_v36  ;;  %v318_v48 = vrot.slane %v317_v42, 4  ;;  %v327_v50 = vrot.slane %v326_v43, 4 }
  0xb4   : > { %v315_v47 = vadd.f32 %v314_v39, %v313_v38  ;;  %vm324_vm4 = vcmask 122880   ;;  %v335_v52 = vrot.slane %v334_v44, 4  ;;  %v342_v53 = vsel %vm316_vm2, %v292_v31, 0.0 }
  0xb5   : > { %v1061_v51 = vpop.eup %875  ;;  %v350_v54 = vsel %vm316_vm2, %v296_v32, 0.0  ;;  %v358_v57 = vsel %vm316_vm2, %v300_v33, 0.0  ;;  %v319_v49 = vadd.f32 %v318_v48, %v317_v42  ;;  %v328_v58 = vadd.f32 %v327_v50, %v326_v43 }
  0xb6   : > { %v343_v60 = vrot.slane %v342_v53, 4  ;;  %v351_v61 = vrot.slane %v350_v54, 4  ;;  %v336_v62 = vadd.f32 %v335_v52, %v334_v44  ;;  %v359_v0 = vrot.slane %v358_v57, 4 }
  0xb7   : > { %v366_v2 = vsel %vm316_vm2, %v304_v34, 0.0  ;;  %v374_v3 = vsel %vm316_vm2, %v308_v41, 0.0  ;;  %v320_v4 = vrot.slane %v319_v49, 2  ;;  %v329_v6 = vrot.slane %v328_v58, 2 }
  0xb8   : > { %v344_v7 = vadd.f32 %v343_v60, %v342_v53  ;;  %v352_v8 = vadd.f32 %v351_v61, %v350_v54  ;;  %v337_v9 = vrot.slane %v336_v62, 2  ;;  %v360_v10 = vadd.f32 %v359_v0, %v358_v57 }
  0xb9   : > { %v367_v11 = vrot.slane %v366_v2, 4  ;;  %v375_v5 = vrot.slane %v374_v3, 4  ;;  %vm461_vm6 = vcmp.eq.f32.partialorder %v968_v55, 0.0  ;;  %v321_v14 = vadd.f32 %v320_v4, %v319_v49 }
  0xba   : > { %v330_v18 = vadd.f32 %v329_v6, %v328_v58  ;;  %v345_v59 = vrot.slane %v344_v7, 2  ;;  %v353_v19 = vrot.slane %v352_v8, 2  ;;  %vm463_vm7 = vcmp.eq.f32.partialorder %v997_v13, 0.0 }
  0xbb   : > { %v338_v56 = vadd.f32 %v337_v9, %v336_v62  ;;  %v361_v22 = vrot.slane %v360_v10, 2  ;;  %v368_v23 = vadd.f32 %v367_v11, %v366_v2  ;;  %v376_v24 = vadd.f32 %v375_v5, %v374_v3  ;;  %vm464_vm10 = vmor %vm461_vm6, %vm463_vm7 }
  0xbc   : > { %vm452_vm8 = vcmp.eq.f32.partialorder %v1033_v40, inf  ;;  %v322_v25 = vrot.slane %v321_v14, 1  ;;  %v331_v26 = vrot.slane %v330_v18, 1  ;;  %v346_v27 = vadd.f32 %v345_v59, %v344_v7 }
  0xbd   : > { %v354_v29 = vadd.f32 %v353_v19, %v352_v8  ;;  %vm454_vm9 = vcmp.eq.f32.partialorder %v1033_v40, 0.0  ;;  %v339_v30 = vrot.slane %v338_v56, 1  ;;  %v362_v31 = vadd.f32 %v361_v22, %v360_v10 }
  0xbe   : > { %v369_v32 = vrot.slane %v368_v23, 2  ;;  %v377_v33 = vrot.slane %v376_v24, 2  ;;  %v323_v34 = vadd.f32 %v322_v25, %v321_v14  ;;  %v332_v35 = vadd.f32 %v331_v26, %v330_v18 }
  0xbf   : > { %v347_v36 = vrot.slane %v346_v27, 1  ;;  %v355_v37 = vrot.slane %v354_v29, 1  ;;  %v340_v38 = vadd.f32 %v339_v30, %v338_v56  ;;  %v363_v39 = vrot.slane %v362_v31, 1 }
  0xc0   : > { %v370_v41 = vadd.f32 %v369_v32, %v368_v23  ;;  %v378_v42 = vadd.f32 %v377_v33, %v376_v24  ;;  %v382_v48 = vsel %vm316_vm2, %v312_v45, 0.0  ;;  %v390_v50 = vsel %vm316_vm2, %v315_v47, 0.0  ;;  %325 = vst.msk [vmem:[#allocation2] sm:$0x1] %vm324_vm4, %v323_v34  ;;  %333 = vst.msk [vmem:[#allocation2 + $0x2] sm:$0x1] %vm324_vm4, %v332_v35 }
  0xc1   : > { %v348_v43 = vadd.f32 %v347_v36, %v346_v27  ;;  %v356_v44 = vadd.f32 %v355_v37, %v354_v29  ;;  %v364_v52 = vadd.f32 %v363_v39, %v362_v31  ;;  %v383_v57 = vrot.slane %v382_v48, 4  ;;  %341 = vst.msk [vmem:[#allocation2 + $0x4] sm:$0x1] %vm324_vm4, %v340_v38 }
  0xc2   : > { %v371_v53 = vrot.slane %v370_v41, 1  ;;  %v379_v54 = vrot.slane %v378_v42, 1  ;;  %v391_v49 = vrot.slane %v390_v50, 4  ;;  %v451_v45 = vmul.f32 %v1061_v51, %v1033_v40 }
  0xc3   : > { %357 = vst.msk [vmem:[#allocation2 + $0x8] sm:$0x1] %vm324_vm4, %v356_v44  ;;  %349 = vst.msk [vmem:[#allocation2 + $0x6] sm:$0x1] %vm324_vm4, %v348_v43  ;;  %v455_v47 = vand.u32 2147483648, %v1033_v40  ;;  %v462_v58 = vsel %vm461_vm6, 1.0, %v1041_v46  ;;  %v384_v62 = vadd.f32 %v383_v57, %v382_v48 }
  0xc4   : > { %365 = vst.msk [vmem:[#allocation2 + $0xa] sm:$0x1] %vm324_vm4, %v364_v52  ;;  %v372_v60 = vadd.f32 %v371_v53, %v370_v41  ;;  %v380_v61 = vadd.f32 %v379_v54, %v378_v42  ;;  %v469_v0 = vmul.f32 0.309017, %v462_v58  ;;  %v392_v2 = vadd.f32 %v391_v49, %v390_v50 }
  0xc5   : > { %v453_v3 = vsel %vm452_vm8, %v1033_v40, %v451_v45  ;;  %v474_v4 = vmul.f32 0.58778524, %v462_v58  ;;  %v479_v6 = vmul.f32 0.809017, %v462_v58  ;;  %v385_v51 = vrot.slane %v384_v62, 2 }
  0xc6   : > { %373 = vst.msk [vmem:[#allocation2 + $0xc] sm:$0x1] %vm324_vm4, %v372_v60  ;;  %381 = vst.msk [vmem:[#allocation2 + $0xe] sm:$0x1] %vm324_vm4, %v380_v61  ;;  %v456_v46 = vsel %vm454_vm9, %v455_v47, %v453_v3  ;;  %v470_v7 = vsub.f32 %v978_v63, %v469_v0  ;;  %v484_v8 = vmul.f32 0.95105654, %v462_v58  ;;  %v504_v27 = vsub.f32 %v1025_v28, %v469_v0 }
  0xc7   : > { %v393_v9 = vrot.slane %v392_v2, 2  ;;  %v1098_v10 = vsel %vm464_vm10, 1.0, %v456_v46  ;;  %v466_v11 = vsub.f32 1.0, %v456_v46  ;;  %v475_v5 = vsub.f32 %v983_v1, %v474_v4 }
  0xc8   : > { %v386_v14 = vadd.f32 %v385_v51, %v384_v62  ;;  %vm471_vm11 = vcmp.ge.f32.partialorder %v470_v7, 0.0  ;;  %v480_v18 = vsub.f32 %v1003_v15, %v479_v6  ;;  %v485_v40 = vsub.f32 %v1006_v16, %v484_v8 }
  0xc9   : > { %v394_v59 = vadd.f32 %v393_v9, %v392_v2  ;;  %v1103_v13 = vsel %vm464_vm10, 0.0, %v466_v11  ;;  %v472_v55 = vsel %vm471_vm11, 1.0, %v905_v12  ;;  %vm476_vm12 = vcmp.ge.f32.partialorder %v475_v5, 0.0 }
  0xca   : > { %v387_v63 = vrot.slane %v386_v14, 1  ;;  %v477_v19 = vsel %vm476_vm12, 1.0, %v905_v12  ;;  %vm481_vm13 = vcmp.ge.f32.partialorder %v480_v18, 0.0  ;;  %vm486_vm14 = vcmp.ge.f32.partialorder %v485_v40, 0.0 }
  0xcb   : > { %v395_v56 = vrot.slane %v394_v59, 1  ;;  %v482_v1 = vsel %vm481_vm13, 1.0, %v905_v12  ;;  %v487_v22 = vsel %vm486_vm14, 1.0, %v905_v12  ;;  %v488_v23 = vsub.f32 0.0, %v462_v58 }
  0xcc   : > { %v388_v15 = vadd.f32 %v387_v63, %v386_v14  ;;  %v492_v16 = vsub.f32 %v1009_v17, %v484_v8  ;;  %v496_v24 = vsub.f32 %v1015_v20, %v479_v6  ;;  %v500_v25 = vsub.f32 %v1018_v21, %v474_v4 }
  0xcd   : > { %v396_v26 = vadd.f32 %v395_v56, %v394_v59  ;;  %vm489_vm15 = vcmp.ge.f32.partialorder %v488_v23, 0.0  ;;  %v507_v29 = vsub.f32 1.0, %v472_v55  ;;  %vm505_vm6 = vcmp.ge.f32.partialorder %v504_v27, 0.0 }
  0xce   : > { %389 = vst.msk [vmem:[#allocation2 + $0x10] sm:$0x1] %vm324_vm4, %v388_v15  ;;  %v490_v30 = vsel %vm489_vm15, 1.0, %v905_v12  ;;  %vm493_vm1 = vcmp.ge.f32.partialorder %v492_v16, 0.0  ;;  %vm497_vm3 = vcmp.ge.f32.partialorder %v496_v24, 0.0  ;;  %vm501_vm5 = vcmp.ge.f32.partialorder %v500_v25, 0.0 }
  0xcf   : > { %397 = vst.msk [vmem:[#allocation2 + $0x12] sm:$0x1] %vm324_vm4, %v396_v26  ;;  %v494_v17 = vsel %vm493_vm1, 1.0, %v905_v12  ;;  %v498_v20 = vsel %vm497_vm3, 1.0, %v905_v12  ;;  %v502_v21 = vsel %vm501_vm5, 1.0, %v905_v12  ;;  %v506_v31 = vsel %vm505_vm6, 1.0, %v905_v12 }
  0xd0   : > { %v508_v28 = vmul.f32 %v507_v29, %v1098_v10  ;;  %v511_v32 = vsub.f32 %v472_v55, %v477_v19  ;;  %v513_v33 = vmul.f32 %v507_v29, %v1103_v13  ;;  %v509_v34 = vmul.f32 %v506_v31, %v1103_v13 }
  0xd1   : > { %v515_v35 = vsub.f32 %v477_v19, %v482_v1  ;;  %v519_v36 = vsub.f32 %v482_v1, %v487_v22  ;;  %v523_v37 = vsub.f32 %v487_v22, %v490_v30  ;;  %v527_v41 = vsub.f32 %v490_v30, %v494_v17 }
  0xd2   : > { %v512_v38 = vmul.f32 %v511_v32, %v1098_v10  ;;  %v517_v39 = vmul.f32 %v511_v32, %v1103_v13  ;;  %v531_v42 = vsub.f32 %v494_v17, %v498_v20  ;;  %v510_v43 = vadd.f32 %v509_v34, %v508_v28 }
  0xd3   : > { %v516_v44 = vmul.f32 %v515_v35, %v1098_v10  ;;  %v520_v48 = vmul.f32 %v519_v36, %v1098_v10  ;;  %v521_v50 = vmul.f32 %v515_v35, %v1103_v13  ;;  %v524_v53 = vmul.f32 %v523_v37, %v1098_v10 }
  0xd4   : > { %v514_v52 = vadd.f32 %v513_v33, %v512_v38  ;;  %v525_v54 = vmul.f32 %v519_v36, %v1103_v13  ;;  %v528_v57 = vmul.f32 %v527_v41, %v1098_v10  ;;  %v529_v47 = vmul.f32 %v523_v37, %v1103_v13 }
  0xd5   : > { %v518_v49 = vadd.f32 %v517_v39, %v516_v44  ;;  %v522_v45 = vadd.f32 %v521_v50, %v520_v48  ;;  %v532_v58 = vmul.f32 %v531_v42, %v1098_v10  ;;  %v533_v61 = vmul.f32 %v527_v41, %v1103_v13 }
  0xd6   : > { %v526_v60 = vadd.f32 %v525_v54, %v524_v53  ;;  %v535_v62 = vsub.f32 %v498_v20, %v502_v21  ;;  %v537_v0 = vmul.f32 %v531_v42, %v1103_v13  ;;  %v530_v2 = vadd.f32 %v529_v47, %v528_v57 }
  0xd7   : > { %v539_v3 = vsub.f32 %v502_v21, %v506_v31  ;;  %v543_v4 = vmul.f32 %v506_v31, %v1098_v10  ;;  %v546_v6 = vsel %vm316_vm2, %v510_v43, 0.0  ;;  %v534_v51 = vadd.f32 %v533_v61, %v532_v58 }
  0xd8   : > { %v536_v46 = vmul.f32 %v535_v62, %v1098_v10  ;;  %v541_v7 = vmul.f32 %v535_v62, %v1103_v13  ;;  %v547_v8 = vrot.slane %v546_v6, 4  ;;  %v554_v5 = vsel %vm316_vm2, %v514_v52, 0.0 }
  0xd9   : > { %v540_v9 = vmul.f32 %v539_v3, %v1098_v10  ;;  %v544_v11 = vmul.f32 %v539_v3, %v1103_v13  ;;  %v562_v14 = vsel %vm316_vm2, %v518_v49, 0.0  ;;  %v555_v59 = vrot.slane %v554_v5, 4 }
  0xda   : > { %v538_v18 = vadd.f32 %v537_v0, %v536_v46  ;;  %v548_v40 = vadd.f32 %v547_v8, %v546_v6  ;;  %v563_v55 = vrot.slane %v562_v14, 4  ;;  %v570_v56 = vsel %vm316_vm2, %v522_v45, 0.0 }
  0xdb   : > { %v542_v63 = vadd.f32 %v541_v7, %v540_v9  ;;  %v545_v19 = vadd.f32 %v544_v11, %v543_v4  ;;  %v578_v1 = vsel %vm316_vm2, %v526_v60, 0.0  ;;  %v556_v23 = vadd.f32 %v555_v59, %v554_v5 }
  0xdc   : > { %v549_v22 = vrot.slane %v548_v40, 2  ;;  %v564_v15 = vadd.f32 %v563_v55, %v562_v14  ;;  %v571_v10 = vrot.slane %v570_v56, 4  ;;  %v579_v16 = vrot.slane %v578_v1, 4 }
  0xdd   : > { %v586_v13 = vsel %vm316_vm2, %v530_v2, 0.0  ;;  %v594_v24 = vsel %vm316_vm2, %v534_v51, 0.0  ;;  %v602_v25 = vsel %vm316_vm2, %v538_v18, 0.0  ;;  %v557_v27 = vrot.slane %v556_v23, 2 }
  0xde   : > { %v550_v26 = vadd.f32 %v549_v22, %v548_v40  ;;  %v565_v29 = vrot.slane %v564_v15, 2  ;;  %v572_v30 = vadd.f32 %v571_v10, %v570_v56  ;;  %v580_v17 = vadd.f32 %v579_v16, %v578_v1 }
  0xdf   : > { %v587_v20 = vrot.slane %v586_v13, 4  ;;  %v595_v21 = vrot.slane %v594_v24, 4  ;;  %v603_v31 = vrot.slane %v602_v25, 4  ;;  %v558_v32 = vadd.f32 %v557_v27, %v556_v23 }
  0xe0   : > { %v551_v28 = vrot.slane %v550_v26, 1  ;;  %v566_v33 = vadd.f32 %v565_v29, %v564_v15  ;;  %v573_v34 = vrot.slane %v572_v30, 2  ;;  %v581_v35 = vrot.slane %v580_v17, 2 }
  0xe1   : > { %v588_v36 = vadd.f32 %v587_v20, %v586_v13  ;;  %v596_v37 = vadd.f32 %v595_v21, %v594_v24  ;;  %v604_v38 = vadd.f32 %v603_v31, %v602_v25  ;;  %v559_v41 = vrot.slane %v558_v32, 1 }
  0xe2   : > { %v552_v39 = vadd.f32 %v551_v28, %v550_v26  ;;  %v567_v42 = vrot.slane %v566_v33, 1  ;;  %v574_v43 = vadd.f32 %v573_v34, %v572_v30  ;;  %v582_v44 = vadd.f32 %v581_v35, %v580_v17 }
  0xe3   : > { %v589_v48 = vrot.slane %v588_v36, 2  ;;  %v597_v50 = vrot.slane %v596_v37, 2  ;;  %v605_v52 = vrot.slane %v604_v38, 2  ;;  %v560_v53 = vadd.f32 %v559_v41, %v558_v32 }
  0xe4   : > { %v568_v54 = vadd.f32 %v567_v42, %v566_v33  ;;  %v575_v57 = vrot.slane %v574_v43, 1  ;;  %v610_v49 = vsel %vm316_vm2, %v542_v63, 0.0  ;;  %553 = vst.msk [vmem:[#allocation2 + $0x1] sm:$0x1] %vm324_vm4, %v552_v39  ;;  %v583_v45 = vrot.slane %v582_v44, 1 }
  0xe5   : > { %v590_v47 = vadd.f32 %v589_v48, %v588_v36  ;;  %v598_v58 = vadd.f32 %v597_v50, %v596_v37  ;;  %v606_v60 = vadd.f32 %v605_v52, %v604_v38  ;;  %v611_v62 = vrot.slane %v610_v49, 4  ;;  %561 = vst.msk [vmem:[#allocation2 + $0x3] sm:$0x1] %vm324_vm4, %v560_v53 }
  0xe6   : > { %v576_v61 = vadd.f32 %v575_v57, %v574_v43  ;;  %v618_v0 = vsel %vm316_vm2, %v545_v19, 0.0  ;;  %569 = vst.msk [vmem:[#allocation2 + $0x5] sm:$0x1] %vm324_vm4, %v568_v54  ;;  %v584_v2 = vadd.f32 %v583_v45, %v582_v44  ;;  %vm720_vm7 = vcmask 15360  }
  0xe7   : > { %v591_v3 = vrot.slane %v590_v47, 1  ;;  %v599_v4 = vrot.slane %v598_v58, 1  ;;  %v607_v6 = vrot.slane %v606_v60, 1  ;;  %v612_v51 = vadd.f32 %v611_v62, %v610_v49 }
  0xe8   : > { %v619_v46 = vrot.slane %v618_v0, 4  ;;  %577 = vst.msk [vmem:[#allocation2 + $0x7] sm:$0x1] %vm324_vm4, %v576_v61  ;;  %585 = vst.msk [vmem:[#allocation2 + $0x9] sm:$0x1] %vm324_vm4, %v584_v2  ;;  %vm723_vm8 = vcmask 11264  }
  0xe9   : > { %v592_v7 = vadd.f32 %v591_v3, %v590_v47  ;;  %v600_v8 = vadd.f32 %v599_v4, %v598_v58  ;;  %v608_v9 = vadd.f32 %v607_v6, %v606_v60  ;;  %v613_v11 = vrot.slane %v612_v51, 2 }
  0xea   : > { %v620_v5 = vadd.f32 %v619_v46, %v618_v0 }
  0xeb   : > { %593 = vst.msk [vmem:[#allocation2 + $0xb] sm:$0x1] %vm324_vm4, %v592_v7  ;;  %601 = vst.msk [vmem:[#allocation2 + $0xd] sm:$0x1] %vm324_vm4, %v600_v8  ;;  %v614_v14 = vadd.f32 %v613_v11, %v612_v51 }
  0xec   : > { %609 = vst.msk [vmem:[#allocation2 + $0xf] sm:$0x1] %vm324_vm4, %v608_v9  ;;  %v621_v18 = vrot.slane %v620_v5, 2 }
  0xed   : > { %v615_v40 = vrot.slane %v614_v14, 1 }
  0xee   : > { %v622_v59 = vadd.f32 %v621_v18, %v620_v5 }
  0xef   : > { %v626_v55 = vld [vmem:[#allocation2] sm:$0xff]  ;;  %v616_v63 = vadd.f32 %v615_v40, %v614_v14 }
  0xf0   : > { %v623_v19 = vrot.slane %v622_v59, 1  ;;  %830 = vmatmul.mubr.msk.f32.vlgmr.msra.gmra.mrb[0].mxu0 %vm316_vm2, %v626_v55 }
  0xf1   : > { %617 = vst.msk [vmem:[#allocation2 + $0x11] sm:$0x1] %vm324_vm4, %v616_v63 }
  0xf2   : > { %v624_v56 = vadd.f32 %v623_v19, %v622_v59 }
  0xf3   : > { %v627_v1 = vld [vmem:[#allocation2 + $0x8] sm:$0xff] }
  0xf4   : > { %833 = vmatmul.mubr.msk.f32.vlgmr.msra.gmra.mrb[0].mxu1 %vm316_vm2, %v627_v1  ;;  %625 = vst.msk [vmem:[#allocation2 + $0x13] sm:$0x1] %vm324_vm4, %v624_v56 }
  0xf5   : > { %835 = vmatprep.mubr.msk.f32.mxu1 %vm904_vm0, %v905_v12 }
  0xfb   : > { %v628_v22 = vld [vmem:[#allocation2 + $0x10] sm:$0xf] }
  0xfc   : > { %836 = vmatmul.mubr.msk.f32.gmra.mrb[2].mxu1 %vm316_vm2, %v628_v22 }
 0x1c3   : > { %v706_v23 = vpop.f32.mrb[0].mxu0 }
 0x1c4   : > { %721 = vst.msk [vmem:[%s165_s25] sm:$0xff] %vm720_vm7, %v706_v23  ;;  %v831_v15 = vpop.f32.mrb[1].mxu0 }
 0x1c7   : > { %v711_v10 = vpop.f32.mrb[0].mxu1 }
 0x1c8   : > { %722 = vst.msk [vmem:[%s165_s25 + $0x8] sm:$0xff] %vm720_vm7, %v711_v10  ;;  %v834_v16 = vpop.f32.mrb[1].mxu1 }
 0x1cf   : > { %v716_v13 = vpop.f32.mrb[2].mxu1 }
 0x1d0   : > { %724 = vst.msk [vmem:[%s165_s25 + $0x10] sm:$0xf] %vm723_vm8, %v716_v13  ;;  %v837_v24 = vpop.f32.mrb[3].mxu1 }
 0x1d1 PF: > { %s12_s11 = sadd.s32 1, %s899_s11   ;;  %s1182_s9 = smov %s895_s10 }
 0x1d2   : > { %p9_p5 = scmp.ge.s32.totalorder %s12_s11, 4   ;;  %s1183_s10 = smov %s1185_s12 }
 0x1d4   :  { %11 = sbr.rel (!%p9_p5) target bundleno = 2 (0x2), region = 58 }

</bundles_post_ra>
